<compile_context>
chip_gen: v5e
topology: v5e:2x2
jax: 0.10.0
libtpu: 0.0.40
codegen_flags: <defaults>
</compile_context>

<pallas_src>
import functools
import math

import jax
import jax.numpy as jnp
from jax.experimental import pallas as pl
from jax.experimental.pallas import tpu as pltpu


def _cdiv(a: int, b: int) -> int:
    return -(-a // b)


def _round_up(x: int, m: int) -> int:
    return _cdiv(x, m) * m


# ---------------------------------------------------------------------------
# Fused MLP kernel: chained matmul (bf16 operands, f32 accum) + bias (+ ReLU)
# ---------------------------------------------------------------------------
def _fused_mlp_kernel(*refs, n_layers: int, compute_dtype):
    x_ref = refs[0]
    wb_refs = refs[1:1 + 2 * n_layers]
    o_ref = refs[1 + 2 * n_layers]

    h = x_ref[...].astype(jnp.float32)
    for i in range(n_layers):
        w = wb_refs[2 * i][...]
        b = wb_refs[2 * i + 1][...].astype(jnp.float32)
        # bf16 operands feed the MXU natively on v5e/v6e/v7x; f32 accumulation.
        h = jnp.dot(h.astype(compute_dtype), w.astype(compute_dtype),
                    preferred_element_type=jnp.float32)
        h = h + b
        if i < n_layers - 1:
            h = jnp.maximum(h, 0.0)          # f32 VPU epilogue (v5e has no bf16 VPU)
    o_ref[...] = h.astype(o_ref.dtype)


# ---------------------------------------------------------------------------
# Wrapper: one pallas_call, batch tiled along a single "parallel" grid axis
# ---------------------------------------------------------------------------
def fused_mlp_pallas(x2d, params, *, tm_max: int = 1024, min_batch_tiles: int = 2,
                     compute_dtype=jnp.bfloat16):
    """y = MLP(x2d) with x2d:(B, D); all layers fused in one pallas_call.

    params: list of (w, b) with w:(K, N) (ideally bf16), b:(1, N) f32.  Weights
    are full-extent, constant-index blocks -> VMEM-resident across grid steps;
    the hidden activation never touches HBM.
    """
    B, D = x2d.shape
    n_layers = len(params)
    out_dim = params[-1][0].shape[1]

    # --- batch tiling: minimal padding, >=2 tiles for v7x megacore when possible
    n_tiles = max(_cdiv(B, tm_max), 1)
    if B >= min_batch_tiles * 8:
        n_tiles = max(n_tiles, min_batch_tiles)
    tm = _round_up(_cdiv(B, n_tiles), 8)      # sublane-aligned rows per tile
    Mp = n_tiles * tm                         # padding is < 8*n_tiles rows
    if Mp != B:
        x2d = jnp.pad(x2d, ((0, Mp - B), (0, 0)))

    flat_args = [x2d]
    for w, b in params:
        flat_args += [w, b]

    # --- VMEM budget: double-buffered in/out tiles + resident weights + f32 headroom
    act_item = x2d.dtype.itemsize
    weight_bytes = sum(w.size * w.dtype.itemsize + b.size * b.dtype.itemsize
                       for w, b in params)
    max_dim = max([D, out_dim] + [w.shape[1] for w, _ in params])
    est = (2 * tm * (D + out_dim) * act_item   # in + out tiles, double-buffered
           + 2 * weight_bytes                  # weights/biases (<= 2 buffers)
           + 4 * tm * max_dim * 4)             # f32 working copies headroom
    vmem_limit = min(max(int(est * 1.25), 32 << 20), 48 << 20)

    flops = 2 * Mp * sum(w.shape[0] * w.shape[1] for w, _ in params)
    bytes_accessed = (Mp * D + Mp * out_dim) * act_item + weight_bytes

    kernel = functools.partial(_fused_mlp_kernel, n_layers=n_layers,
                               compute_dtype=compute_dtype)

    def _build_in_specs(resident_weights: bool):
        wb_kwargs = ({"pipeline_mode": pl.Buffered(1)} if resident_weights else {})
        specs = [pl.BlockSpec((tm, D), lambda i: (i, 0))]      # batch tile of x
        for w, b in params:
            K, N = w.shape
            # Full-extent blocks, constant index_map -> resident across grid.
            specs.append(pl.BlockSpec((K, N), lambda i: (0, 0), **wb_kwargs))
            specs.append(pl.BlockSpec((1, N), lambda i: (0, 0), **wb_kwargs))
        return specs

    last_err = None
    out = None
    for resident_weights in (True, False):
        try:
            out = pl.pallas_call(
                kernel,
                out_shape=jax.ShapeDtypeStruct((Mp, out_dim), x2d.dtype),
                grid_spec=pl.GridSpec(
                    grid=(Mp // tm,),
                    in_specs=_build_in_specs(resident_weights),
                    out_specs=pl.BlockSpec((tm, out_dim), lambda i: (i, 0)),
                ),
                compiler_params=pltpu.CompilerParams(
                    dimension_semantics=("parallel",),
                    vmem_limit_bytes=vmem_limit,
                ),
                cost_estimate=pl.CostEstimate(
                    flops=flops, transcendentals=0,
                    bytes_accessed=bytes_accessed,
                ),
            )(*flat_args)
            break
        except Exception as e:  # fall back without Buffered(1) if unsupported
            last_err = e
            out = None
    if out is None:
        raise last_err

    return out if Mp == B else out[:B]


# ---------------------------------------------------------------------------
# Image2ImageMLP parameters + forward
# ---------------------------------------------------------------------------
def init_image2image_mlp(key, height, width, channels, hidden_dim=128,
                         num_layers=3, weight_dtype=jnp.bfloat16,
                         bias_dtype=jnp.float32):
    """Deterministic init mirroring nn.Linear default (uniform +/-1/sqrt(fan_in)).

    Layer structure (same as the PyTorch module):
      Linear(D, H), [Linear(H, H)] * (num_layers - 1), Linear(H, D)
    Weights stored as (in_dim, out_dim) in bf16 (halves DMA + VMEM, native MXU
    operand dtype); biases stay f32.
    """
    d = height * width * channels
    dims = [d] + [hidden_dim] * num_layers + [d]
    params = []
    for i in range(len(dims) - 1):
        fan_in, fan_out = dims[i], dims[i + 1]
        key, kw, kb = jax.random.split(key, 3)
        bound = 1.0 / math.sqrt(fan_in)
        w = jax.random.uniform(kw, (fan_in, fan_out), jnp.float32, -bound, bound)
        b = jax.random.uniform(kb, (1, fan_out), jnp.float32, -bound, bound)
        params.append((w.astype(weight_dtype), b.astype(bias_dtype)))
    return params


def image2image_mlp_forward(params, x, **kwargs):
    """x: (B, C, H, W) -> (B, C, H, W); the whole MLP runs in one Pallas call."""
    orig_shape = x.shape
    h = x.reshape(orig_shape[0], -1)      # (B, C*H*W), row-major == torch .view
    h = fused_mlp_pallas(h, params, **kwargs)
    return h.reshape(orig_shape)


# ---------------------------------------------------------------------------
# Pure-JAX references
# ---------------------------------------------------------------------------
def _reference_forward_matched(params, x, compute_dtype=jnp.bfloat16):
    """Same numerics as the kernel (bf16 operands, f32 accumulation)."""
    orig_shape = x.shape
    h = x.reshape(orig_shape[0], -1).astype(jnp.float32)
    n = len(params)
    for i, (w, b) in enumerate(params):
        h = jnp.dot(h.astype(compute_dtype), w.astype(compute_dtype),
                    preferred_element_type=jnp.float32) + b.astype(jnp.float32)
        if i < n - 1:
            h = jnp.maximum(h, 0.0)
    return h.astype(x.dtype).reshape(orig_shape)


def _reference_forward_f32(params, x):
    """Full-f32 reference (module semantics); kernel should be close."""
    orig_shape = x.shape
    h = x.reshape(orig_shape[0], -1).astype(jnp.float32)
    n = len(params)
    for i, (w, b) in enumerate(params):
        h = h @ w.astype(jnp.float32) + b.astype(jnp.float32)
        if i < n - 1:
            h = jnp.maximum(h, 0.0)
    return h.astype(x.dtype).reshape(orig_shape)


if __name__ == "__main__":
    B, C, H, W = 2, 4, 16, 16            # input_output_dim = 4*16*16 = 1024
    hidden_dim, num_layers = 128, 3

    key = jax.random.PRNGKey(0)
    key, kx = jax.random.split(key)
    x = jax.random.normal(kx, (B, C, H, W), dtype=jnp.float32)

    params = init_image2image_mlp(key, H, W, C, hidden_dim, num_layers)

    out = image2image_mlp_forward(params, x)
    out = jax.block_until_ready(out)
    assert out.shape == x.shape

    # Bit-for-bit-ish check against a reference with identical precision policy.
    ref_matched = _reference_forward_matched(params, x)
    assert jnp.allclose(out, ref_matched, atol=1e-3, rtol=1e-3), \
        "mismatch vs matched-precision reference"

    # Sanity check against the full-f32 module semantics (bf16 operand error only).
    ref_f32 = _reference_forward_f32(params, x)
    assert jnp.allclose(out, ref_f32, atol=1e-1, rtol=1e-1), \
        "mismatch vs f32 reference"

    print("KERNEL_OK")
</pallas_src>

<mosaic_0001>
module attributes {stable_mosaic.version = 11 : i64} {
  func.func @_fused_mlp_kernel(%arg0: i32, %arg1: memref<8x1024xf32, #tpu.memory_space<vmem>>, %arg2: memref<1024x128xbf16, #tpu.memory_space<vmem>>, %arg3: memref<1x128xf32, #tpu.memory_space<vmem>>, %arg4: memref<128x128xbf16, #tpu.memory_space<vmem>>, %arg5: memref<1x128xf32, #tpu.memory_space<vmem>>, %arg6: memref<128x128xbf16, #tpu.memory_space<vmem>>, %arg7: memref<1x128xf32, #tpu.memory_space<vmem>>, %arg8: memref<128x1024xbf16, #tpu.memory_space<vmem>>, %arg9: memref<1x1024xf32, #tpu.memory_space<vmem>>, %arg10: memref<8x1024xf32, #tpu.memory_space<vmem>>) attributes {dimension_semantics = [#tpu.dimension_semantics<parallel>], iteration_bounds = array<i64: 1>, scalar_prefetch = 0 : i64, scratch_operands = 0 : i64, tpu.core_type = #tpu.core_type<tc>, window_params = [{transform_indices = @transform_0, window_bounds = array<i64: 8, 1024>}, {pipeline_mode = #tpu.pipeline_mode<synchronous>, transform_indices = @transform_1, window_bounds = array<i64: 1024, 128>}, {pipeline_mode = #tpu.pipeline_mode<synchronous>, transform_indices = @transform_2, window_bounds = array<i64: 1, 128>}, {pipeline_mode = #tpu.pipeline_mode<synchronous>, transform_indices = @transform_3, window_bounds = array<i64: 128, 128>}, {pipeline_mode = #tpu.pipeline_mode<synchronous>, transform_indices = @transform_4, window_bounds = array<i64: 1, 128>}, {pipeline_mode = #tpu.pipeline_mode<synchronous>, transform_indices = @transform_5, window_bounds = array<i64: 128, 128>}, {pipeline_mode = #tpu.pipeline_mode<synchronous>, transform_indices = @transform_6, window_bounds = array<i64: 1, 128>}, {pipeline_mode = #tpu.pipeline_mode<synchronous>, transform_indices = @transform_7, window_bounds = array<i64: 128, 1024>}, {pipeline_mode = #tpu.pipeline_mode<synchronous>, transform_indices = @transform_8, window_bounds = array<i64: 1, 1024>}, {transform_indices = @transform_9, window_bounds = array<i64: 8, 1024>}]} {
    %c0 = arith.constant 0 : index
    %c0_0 = arith.constant 0 : index
    %0 = vector.load %arg1[%c0, %c0_0] : memref<8x1024xf32, #tpu.memory_space<vmem>>, vector<8x1024xf32>
    %c0_1 = arith.constant 0 : index
    %c0_2 = arith.constant 0 : index
    %1 = vector.load %arg2[%c0_1, %c0_2] : memref<1024x128xbf16, #tpu.memory_space<vmem>>, vector<1024x128xbf16>
    %c0_3 = arith.constant 0 : index
    %c0_4 = arith.constant 0 : index
    %2 = vector.load %arg3[%c0_3, %c0_4] : memref<1x128xf32, #tpu.memory_space<vmem>>, vector<1x128xf32>
    %3 = arith.truncf %0 : vector<8x1024xf32> to vector<8x1024xbf16>
    %cst = arith.constant dense<0.000000e+00> : vector<8x128xf32>
    %4 = tpu.matmul %3, %1, %cst {dimension_numbers = #tpu.dot_dimension_numbers<[1], [0], [0], [1], [0, 0, 1, 1], [], []>} : vector<8x1024xbf16>, vector<1024x128xbf16>, vector<8x128xf32> -> vector<8x128xf32>
    %5 = vector.broadcast %2 : vector<1x128xf32> to vector<8x128xf32>
    %6 = arith.addf %4, %5 : vector<8x128xf32>
    %cst_5 = arith.constant 0.000000e+00 : f32
    %7 = vector.broadcast %cst_5 : f32 to vector<8x128xf32>
    %8 = arith.maximumf %6, %7 : vector<8x128xf32>
    %c0_6 = arith.constant 0 : index
    %c0_7 = arith.constant 0 : index
    %9 = vector.load %arg4[%c0_6, %c0_7] : memref<128x128xbf16, #tpu.memory_space<vmem>>, vector<128x128xbf16>
    %c0_8 = arith.constant 0 : index
    %c0_9 = arith.constant 0 : index
    %10 = vector.load %arg5[%c0_8, %c0_9] : memref<1x128xf32, #tpu.memory_space<vmem>>, vector<1x128xf32>
    %11 = arith.truncf %8 : vector<8x128xf32> to vector<8x128xbf16>
    %cst_10 = arith.constant dense<0.000000e+00> : vector<8x128xf32>
    %12 = tpu.matmul %11, %9, %cst_10 {dimension_numbers = #tpu.dot_dimension_numbers<[1], [0], [0], [1], [0, 0, 1, 1], [], []>} : vector<8x128xbf16>, vector<128x128xbf16>, vector<8x128xf32> -> vector<8x128xf32>
    %13 = vector.broadcast %10 : vector<1x128xf32> to vector<8x128xf32>
    %14 = arith.addf %12, %13 : vector<8x128xf32>
    %cst_11 = arith.constant 0.000000e+00 : f32
    %15 = vector.broadcast %cst_11 : f32 to vector<8x128xf32>
    %16 = arith.maximumf %14, %15 : vector<8x128xf32>
    %c0_12 = arith.constant 0 : index
    %c0_13 = arith.constant 0 : index
    %17 = vector.load %arg6[%c0_12, %c0_13] : memref<128x128xbf16, #tpu.memory_space<vmem>>, vector<128x128xbf16>
    %c0_14 = arith.constant 0 : index
    %c0_15 = arith.constant 0 : index
    %18 = vector.load %arg7[%c0_14, %c0_15] : memref<1x128xf32, #tpu.memory_space<vmem>>, vector<1x128xf32>
    %19 = arith.truncf %16 : vector<8x128xf32> to vector<8x128xbf16>
    %cst_16 = arith.constant dense<0.000000e+00> : vector<8x128xf32>
    %20 = tpu.matmul %19, %17, %cst_16 {dimension_numbers = #tpu.dot_dimension_numbers<[1], [0], [0], [1], [0, 0, 1, 1], [], []>} : vector<8x128xbf16>, vector<128x128xbf16>, vector<8x128xf32> -> vector<8x128xf32>
    %21 = vector.broadcast %18 : vector<1x128xf32> to vector<8x128xf32>
    %22 = arith.addf %20, %21 : vector<8x128xf32>
    %cst_17 = arith.constant 0.000000e+00 : f32
    %23 = vector.broadcast %cst_17 : f32 to vector<8x128xf32>
    %24 = arith.maximumf %22, %23 : vector<8x128xf32>
    %c0_18 = arith.constant 0 : index
    %c0_19 = arith.constant 0 : index
    %25 = vector.load %arg8[%c0_18, %c0_19] : memref<128x1024xbf16, #tpu.memory_space<vmem>>, vector<128x1024xbf16>
    %c0_20 = arith.constant 0 : index
    %c0_21 = arith.constant 0 : index
    %26 = vector.load %arg9[%c0_20, %c0_21] : memref<1x1024xf32, #tpu.memory_space<vmem>>, vector<1x1024xf32>
    %27 = arith.truncf %24 : vector<8x128xf32> to vector<8x128xbf16>
    %cst_22 = arith.constant dense<0.000000e+00> : vector<8x1024xf32>
    %28 = tpu.matmul %27, %25, %cst_22 {dimension_numbers = #tpu.dot_dimension_numbers<[1], [0], [0], [1], [0, 0, 1, 1], [], []>} : vector<8x128xbf16>, vector<128x1024xbf16>, vector<8x1024xf32> -> vector<8x1024xf32>
    %29 = vector.broadcast %26 : vector<1x1024xf32> to vector<8x1024xf32>
    %30 = arith.addf %28, %29 : vector<8x1024xf32>
    %c0_23 = arith.constant 0 : index
    %c0_24 = arith.constant 0 : index
    %31 = vector.load %arg10[%c0_23, %c0_24] : memref<8x1024xf32, #tpu.memory_space<vmem>>, vector<8x1024xf32>
    tpu.vector_store %arg10[%c0_23, %c0_24], %30 {strides = array<i32>} : memref<8x1024xf32, #tpu.memory_space<vmem>>, vector<8x1024xf32>,
    return
  }
  func.func @transform_0(%arg0: i32) -> (i32, i32) {
    %c0_i32 = arith.constant 0 : i32
    %c0_i32_0 = arith.constant 0 : i32
    return %arg0, %c0_i32 : i32, i32
  }
  func.func @transform_1(%arg0: i32) -> (i32, i32) {
    %c0_i32 = arith.constant 0 : i32
    %c0_i32_0 = arith.constant 0 : i32
    %c0_i32_1 = arith.constant 0 : i32
    return %c0_i32, %c0_i32_0 : i32, i32
  }
  func.func @transform_2(%arg0: i32) -> (i32, i32) {
    %c0_i32 = arith.constant 0 : i32
    %c0_i32_0 = arith.constant 0 : i32
    %c0_i32_1 = arith.constant 0 : i32
    return %c0_i32, %c0_i32_0 : i32, i32
  }
  func.func @transform_3(%arg0: i32) -> (i32, i32) {
    %c0_i32 = arith.constant 0 : i32
    %c0_i32_0 = arith.constant 0 : i32
    %c0_i32_1 = arith.constant 0 : i32
    return %c0_i32, %c0_i32_0 : i32, i32
  }
  func.func @transform_4(%arg0: i32) -> (i32, i32) {
    %c0_i32 = arith.constant 0 : i32
    %c0_i32_0 = arith.constant 0 : i32
    %c0_i32_1 = arith.constant 0 : i32
    return %c0_i32, %c0_i32_0 : i32, i32
  }
  func.func @transform_5(%arg0: i32) -> (i32, i32) {
    %c0_i32 = arith.constant 0 : i32
    %c0_i32_0 = arith.constant 0 : i32
    %c0_i32_1 = arith.constant 0 : i32
    return %c0_i32, %c0_i32_0 : i32, i32
  }
  func.func @transform_6(%arg0: i32) -> (i32, i32) {
    %c0_i32 = arith.constant 0 : i32
    %c0_i32_0 = arith.constant 0 : i32
    %c0_i32_1 = arith.constant 0 : i32
    return %c0_i32, %c0_i32_0 : i32, i32
  }
  func.func @transform_7(%arg0: i32) -> (i32, i32) {
    %c0_i32 = arith.constant 0 : i32
    %c0_i32_0 = arith.constant 0 : i32
    %c0_i32_1 = arith.constant 0 : i32
    return %c0_i32, %c0_i32_0 : i32, i32
  }
  func.func @transform_8(%arg0: i32) -> (i32, i32) {
    %c0_i32 = arith.constant 0 : i32
    %c0_i32_0 = arith.constant 0 : i32
    %c0_i32_1 = arith.constant 0 : i32
    return %c0_i32, %c0_i32_0 : i32, i32
  }
  func.func @transform_9(%arg0: i32) -> (i32, i32) {
    %c0_i32 = arith.constant 0 : i32
    %c0_i32_0 = arith.constant 0 : i32
    return %arg0, %c0_i32 : i32, i32
  }
}

module attributes {stable_mosaic.version = 11 : i64} {
  func.func @_fused_mlp_kernel(%arg0: i32, %arg1: memref<8x1024xf32, #tpu.memory_space<vmem>>, %arg2: memref<1024x128xbf16, #tpu.memory_space<vmem>>, %arg3: memref<1x128xf32, #tpu.memory_space<vmem>>, %arg4: memref<128x128xbf16, #tpu.memory_space<vmem>>, %arg5: memref<1x128xf32, #tpu.memory_space<vmem>>, %arg6: memref<128x128xbf16, #tpu.memory_space<vmem>>, %arg7: memref<1x128xf32, #tpu.memory_space<vmem>>, %arg8: memref<128x1024xbf16, #tpu.memory_space<vmem>>, %arg9: memref<1x1024xf32, #tpu.memory_space<vmem>>, %arg10: memref<8x1024xf32, #tpu.memory_space<vmem>>) attributes {dimension_semantics = [#tpu.dimension_semantics<parallel>], iteration_bounds = array<i64: 1>, scalar_prefetch = 0 : i64, scratch_operands = 0 : i64, tpu.core_type = #tpu.core_type<tc>, window_params = [{transform_indices = @transform_0, window_bounds = array<i64: 8, 1024>}, {pipeline_mode = #tpu.pipeline_mode<synchronous>, transform_indices = @transform_1, window_bounds = array<i64: 1024, 128>}, {pipeline_mode = #tpu.pipeline_mode<synchronous>, transform_indices = @transform_2, window_bounds = array<i64: 1, 128>}, {pipeline_mode = #tpu.pipeline_mode<synchronous>, transform_indices = @transform_3, window_bounds = array<i64: 128, 128>}, {pipeline_mode = #tpu.pipeline_mode<synchronous>, transform_indices = @transform_4, window_bounds = array<i64: 1, 128>}, {pipeline_mode = #tpu.pipeline_mode<synchronous>, transform_indices = @transform_5, window_bounds = array<i64: 128, 128>}, {pipeline_mode = #tpu.pipeline_mode<synchronous>, transform_indices = @transform_6, window_bounds = array<i64: 1, 128>}, {pipeline_mode = #tpu.pipeline_mode<synchronous>, transform_indices = @transform_7, window_bounds = array<i64: 128, 1024>}, {pipeline_mode = #tpu.pipeline_mode<synchronous>, transform_indices = @transform_8, window_bounds = array<i64: 1, 1024>}, {transform_indices = @transform_9, window_bounds = array<i64: 8, 1024>}]} {
    %c0 = arith.constant 0 : index
    %c0_0 = arith.constant 0 : index
    %0 = vector.load %arg1[%c0, %c0_0] : memref<8x1024xf32, #tpu.memory_space<vmem>>, vector<8x1024xf32>
    %c0_1 = arith.constant 0 : index
    %c0_2 = arith.constant 0 : index
    %1 = vector.load %arg2[%c0_1, %c0_2] : memref<1024x128xbf16, #tpu.memory_space<vmem>>, vector<1024x128xbf16>
    %c0_3 = arith.constant 0 : index
    %c0_4 = arith.constant 0 : index
    %2 = vector.load %arg3[%c0_3, %c0_4] : memref<1x128xf32, #tpu.memory_space<vmem>>, vector<1x128xf32>
    %3 = arith.truncf %0 : vector<8x1024xf32> to vector<8x1024xbf16>
    %cst = arith.constant dense<0.000000e+00> : vector<8x128xf32>
    %4 = tpu.matmul %3, %1, %cst {dimension_numbers = #tpu.dot_dimension_numbers<[1], [0], [0], [1], [0, 0, 1, 1], [], []>} : vector<8x1024xbf16>, vector<1024x128xbf16>, vector<8x128xf32> -> vector<8x128xf32>
    %5 = vector.broadcast %2 : vector<1x128xf32> to vector<8x128xf32>
    %6 = arith.addf %4, %5 : vector<8x128xf32>
    %cst_5 = arith.constant 0.000000e+00 : f32
    %7 = vector.broadcast %cst_5 : f32 to vector<8x128xf32>
    %8 = arith.maximumf %6, %7 : vector<8x128xf32>
    %c0_6 = arith.constant 0 : index
    %c0_7 = arith.constant 0 : index
    %9 = vector.load %arg4[%c0_6, %c0_7] : memref<128x128xbf16, #tpu.memory_space<vmem>>, vector<128x128xbf16>
    %c0_8 = arith.constant 0 : index
    %c0_9 = arith.constant 0 : index
    %10 = vector.load %arg5[%c0_8, %c0_9] : memref<1x128xf32, #tpu.memory_space<vmem>>, vector<1x128xf32>
    %11 = arith.truncf %8 : vector<8x128xf32> to vector<8x128xbf16>
    %cst_10 = arith.constant dense<0.000000e+00> : vector<8x128xf32>
    %12 = tpu.matmul %11, %9, %cst_10 {dimension_numbers = #tpu.dot_dimension_numbers<[1], [0], [0], [1], [0, 0, 1, 1], [], []>} : vector<8x128xbf16>, vector<128x128xbf16>, vector<8x128xf32> -> vector<8x128xf32>
    %13 = vector.broadcast %10 : vector<1x128xf32> to vector<8x128xf32>
    %14 = arith.addf %12, %13 : vector<8x128xf32>
    %cst_11 = arith.constant 0.000000e+00 : f32
    %15 = vector.broadcast %cst_11 : f32 to vector<8x128xf32>
    %16 = arith.maximumf %14, %15 : vector<8x128xf32>
    %c0_12 = arith.constant 0 : index
    %c0_13 = arith.constant 0 : index
    %17 = vector.load %arg6[%c0_12, %c0_13] : memref<128x128xbf16, #tpu.memory_space<vmem>>, vector<128x128xbf16>
    %c0_14 = arith.constant 0 : index
    %c0_15 = arith.constant 0 : index
    %18 = vector.load %arg7[%c0_14, %c0_15] : memref<1x128xf32, #tpu.memory_space<vmem>>, vector<1x128xf32>
    %19 = arith.truncf %16 : vector<8x128xf32> to vector<8x128xbf16>
    %cst_16 = arith.constant dense<0.000000e+00> : vector<8x128xf32>
    %20 = tpu.matmul %19, %17, %cst_16 {dimension_numbers = #tpu.dot_dimension_numbers<[1], [0], [0], [1], [0, 0, 1, 1], [], []>} : vector<8x128xbf16>, vector<128x128xbf16>, vector<8x128xf32> -> vector<8x128xf32>
    %21 = vector.broadcast %18 : vector<1x128xf32> to vector<8x128xf32>
    %22 = arith.addf %20, %21 : vector<8x128xf32>
    %cst_17 = arith.constant 0.000000e+00 : f32
    %23 = vector.broadcast %cst_17 : f32 to vector<8x128xf32>
    %24 = arith.maximumf %22, %23 : vector<8x128xf32>
    %c0_18 = arith.constant 0 : index
    %c0_19 = arith.constant 0 : index
    %25 = vector.load %arg8[%c0_18, %c0_19] : memref<128x1024xbf16, #tpu.memory_space<vmem>>, vector<128x1024xbf16>
    %c0_20 = arith.constant 0 : index
    %c0_21 = arith.constant 0 : index
    %26 = vector.load %arg9[%c0_20, %c0_21] : memref<1x1024xf32, #tpu.memory_space<vmem>>, vector<1x1024xf32>
    %27 = arith.truncf %24 : vector<8x128xf32> to vector<8x128xbf16>
    %cst_22 = arith.constant dense<0.000000e+00> : vector<8x1024xf32>
    %28 = tpu.matmul %27, %25, %cst_22 {dimension_numbers = #tpu.dot_dimension_numbers<[1], [0], [0], [1], [0, 0, 1, 1], [], []>} : vector<8x128xbf16>, vector<128x1024xbf16>, vector<8x1024xf32> -> vector<8x1024xf32>
    %29 = vector.broadcast %26 : vector<1x1024xf32> to vector<8x1024xf32>
    %30 = arith.addf %28, %29 : vector<8x1024xf32>
    %c0_23 = arith.constant 0 : index
    %c0_24 = arith.constant 0 : index
    %31 = vector.load %arg10[%c0_23, %c0_24] : memref<8x1024xf32, #tpu.memory_space<vmem>>, vector<8x1024xf32>
    tpu.vector_store %arg10[%c0_23, %c0_24], %30 {strides = array<i32>} : memref<8x1024xf32, #tpu.memory_space<vmem>>, vector<8x1024xf32>,
    return
  }
  func.func @transform_0(%arg0: i32) -> (i32, i32) {
    %c0_i32 = arith.constant 0 : i32
    %c0_i32_0 = arith.constant 0 : i32
    return %arg0, %c0_i32 : i32, i32
  }
  func.func @transform_1(%arg0: i32) -> (i32, i32) {
    %c0_i32 = arith.constant 0 : i32
    %c0_i32_0 = arith.constant 0 : i32
    %c0_i32_1 = arith.constant 0 : i32
    return %c0_i32, %c0_i32_0 : i32, i32
  }
  func.func @transform_2(%arg0: i32) -> (i32, i32) {
    %c0_i32 = arith.constant 0 : i32
    %c0_i32_0 = arith.constant 0 : i32
    %c0_i32_1 = arith.constant 0 : i32
    return %c0_i32, %c0_i32_0 : i32, i32
  }
  func.func @transform_3(%arg0: i32) -> (i32, i32) {
    %c0_i32 = arith.constant 0 : i32
    %c0_i32_0 = arith.constant 0 : i32
    %c0_i32_1 = arith.constant 0 : i32
    return %c0_i32, %c0_i32_0 : i32, i32
  }
  func.func @transform_4(%arg0: i32) -> (i32, i32) {
    %c0_i32 = arith.constant 0 : i32
    %c0_i32_0 = arith.constant 0 : i32
    %c0_i32_1 = arith.constant 0 : i32
    return %c0_i32, %c0_i32_0 : i32, i32
  }
  func.func @transform_5(%arg0: i32) -> (i32, i32) {
    %c0_i32 = arith.constant 0 : i32
    %c0_i32_0 = arith.constant 0 : i32
    %c0_i32_1 = arith.constant 0 : i32
    return %c0_i32, %c0_i32_0 : i32, i32
  }
  func.func @transform_6(%arg0: i32) -> (i32, i32) {
    %c0_i32 = arith.constant 0 : i32
    %c0_i32_0 = arith.constant 0 : i32
    %c0_i32_1 = arith.constant 0 : i32
    return %c0_i32, %c0_i32_0 : i32, i32
  }
  func.func @transform_7(%arg0: i32) -> (i32, i32) {
    %c0_i32 = arith.constant 0 : i32
    %c0_i32_0 = arith.constant 0 : i32
    %c0_i32_1 = arith.constant 0 : i32
    return %c0_i32, %c0_i32_0 : i32, i32
  }
  func.func @transform_8(%arg0: i32) -> (i32, i32) {
    %c0_i32 = arith.constant 0 : i32
    %c0_i32_0 = arith.constant 0 : i32
    %c0_i32_1 = arith.constant 0 : i32
    return %c0_i32, %c0_i32_0 : i32, i32
  }
  func.func @transform_9(%arg0: i32) -> (i32, i32) {
    %c0_i32 = arith.constant 0 : i32
    %c0_i32_0 = arith.constant 0 : i32
    return %arg0, %c0_i32 : i32, i32
  }
}

</mosaic_0001>

<bundles_post_ra>
// kernel: tpu_custom_call.1
= control target key start
LH: loop header
LB: loop body
LE: loop exit
PB: predicated region body
PF: predicated region fallthrough
CT: control target
= control target key end

     0   :  { %14 = vsyncpa [#allocation3], 0  ;;  %s2464_s0 = inlined_call_operand.hbm [shape: f32[8,1024], index: 0, kind: input, shape index: {}]   ;;  %s2465_s1 = inlined_call_operand.hbm [shape: bf16[1024,128], index: 1, kind: input, shape index: {}]   ;;  %s2466_s2 = inlined_call_operand.vmem [shape: f32[1,128], index: 2, kind: input, shape index: {}]   ;;  %s2467_s3 = inlined_call_operand.hbm [shape: bf16[128,128], index: 3, kind: input, shape index: {}]   ;;  %s2468_s4 = inlined_call_operand.vmem [shape: f32[1,128], index: 4, kind: input, shape index: {}]   ;;  %s2469_s5 = inlined_call_operand.hbm [shape: bf16[128,128], index: 5, kind: input, shape index: {}]   ;;  %s2470_s6 = inlined_call_operand.vmem [shape: f32[1,128], index: 6, kind: input, shape index: {}]   ;;  %s2471_s7 = inlined_call_operand.hbm [shape: bf16[128,1024], index: 7, kind: input, shape index: {}]   ;;  %s2472_s8 = inlined_call_operand.hbm [shape: f32[1,1024], index: 8, kind: input, shape index: {}]   ;;  %s2473_s9 = inlined_call_operand.hbm [shape: f32[8,1024], index: 9, kind: output, shape index: {}]  }
   0x1   :  { %15 = vsyncpa [#allocation6], 0 }
   0x2   :  { %16 = vsyncpa [#allocation9], 0 }
   0x3   :  { %17 = vsyncpa [#allocation12], 0  ;;  %s34_s11 = sshll.u32 %s2465_s1, 4  ;;  %s35_s11 = int_to_ptr.hbm [resolvable:$true] %s34_s11 }
   0x4   :  { %18 = vsyncpa [#allocation4], 0  ;;  %s2373_s12 = smov [#allocation5]   ;;  %s64_s16 = sshll.u32 %s2469_s5, 4  ;;  %s65_s16 = int_to_ptr.hbm [resolvable:$true] %s64_s16 }
   0x5   :  { %s36_s13 = sshll.u32 %s2373_s12, 4  ;;  %s2374_s17 = smov 64   ;;  %s37_s13 = int_to_ptr.vmem [resolvable:$true] %s36_s13 }
   0x6   :  { %s2375_s18 = smov 4   ;;  %s2376_s19 = smov [#allocation8]  }
   0x7   :  { %42 = dma.hbm_to_vmem [thread:$0]  %s35_s11, 8192, %s37_s13, [#allocation6], %s2374_s17, %s2374_s17, %s2375_s18  }
   0x8   :  { %s66_s20 = sshll.u32 %s2376_s19, 4  ;;  %s24_s23 = sshll.u32 %s2464_s0, 4  ;;  %s67_s20 = int_to_ptr.vmem [resolvable:$true] %s66_s20  ;;  %s25_s23 = int_to_ptr.hbm [resolvable:$true] %s24_s23 }
   0x9   :  { %72 = dma.hbm_to_vmem [thread:$0]  %s65_s16, 1024, %s67_s20, [#allocation9], %s2374_s17, %s2374_s17, %s2375_s18  }
   0xa   :  { %s49_s25 = sshll.u32 %s2467_s3, 4  ;;  %s2377_s26 = smov [#allocation2]   ;;  %s50_s25 = int_to_ptr.hbm [resolvable:$true] %s49_s25 }
   0xb   :  { %s26_s27 = sshll.u32 %s2377_s26, 4  ;;  %s2378_s5 = smov [#allocation7]   ;;  %s27_s27 = int_to_ptr.vmem [resolvable:$true] %s26_s27 }
   0xc   :  { %29 = dma.hbm_to_vmem [thread:$0]  %s25_s23, 1024, %s27_s27, [#allocation3]  }
   0xd   :  { %s51_s28 = sshll.u32 %s2378_s5, 4  ;;  %s79_s10 = sshll.u32 %s2471_s7, 4  ;;  %s52_s28 = int_to_ptr.vmem [resolvable:$true] %s51_s28  ;;  %s80_s10 = int_to_ptr.hbm [resolvable:$true] %s79_s10 }
   0xe   :  { %57 = dma.hbm_to_vmem [thread:$0]  %s50_s25, 1024, %s52_s28, [#allocation6], %s2374_s17, %s2374_s17, %s2375_s18  }
   0xf   :  { %s2379_s0 = smov [#allocation10]   ;;  %s93_s3 = sshll.u32 %s2472_s8, 4  ;;  %s94_s3 = int_to_ptr.hbm [resolvable:$true] %s93_s3 }
  0x10   :  { %s81_s11 = sshll.u32 %s2379_s0, 4  ;;  %s2380_s14 = smov 512   ;;  %s82_s11 = int_to_ptr.vmem [resolvable:$true] %s81_s11 }
  0x11   :  { %s2381_s15 = smov 32   ;;  %s2382_s16 = smov [#allocation11]  }
  0x12   :  { %87 = dma.hbm_to_vmem [thread:$0]  %s80_s10, 8192, %s82_s11, [#allocation9], %s2380_s14, %s2380_s14, %s2381_s15  }
  0x13   :  { %s95_s19 = sshll.u32 %s2382_s16, 4  ;;  %s96_s19 = int_to_ptr.vmem [resolvable:$true] %s95_s19 }
  0x14   :  { %98 = dma.hbm_to_vmem [thread:$0]  %s94_s3, 128, %s96_s19, [#allocation12]  }
  0x15   :  { %2363 = dma.done.wait [#allocation3], 1024  }
  0x16   :  { %2364 = vsyncadd [#allocation3], 4294966272 }
  0x17   :  { %2365 = dma.done.wait [#allocation6], 9216  }
  0x18   :  { %2366 = vsyncadd [#allocation6], 4294958080 }
  0x19   :  { %2367 = dma.done.wait [#allocation9], 9216  }
  0x1a   :  { %2368 = vsyncadd [#allocation9], 4294958080 }
  0x1b   :  { %2369 = dma.done.wait [#allocation12], 128  }
  0x1c   :  { %2370 = vsyncadd [#allocation12], 4294967168  ;;  %v2044_v0 = vld [vmem:[#allocation5 + $0x38] sm:$0xff]  ;;  %v2043_v4 = vld [vmem:[#allocation5 + $0x30] sm:$0xff]  ;;  %s1448_s23 = sshll.u32 %s2473_s9, 4  ;;  %s1449_s23 = int_to_ptr.hbm [resolvable:$true] %s1448_s23 }
  0x1d   :  { %v2052_v1 = vld [vmem:[#allocation5 + $0x78] sm:$0xff]  ;;  %655 = vmatpush.bf16.msra.mxu0 %v2044_v0  ;;  %v2051_v5 = vld [vmem:[#allocation5 + $0x70] sm:$0xff]  ;;  %v2042_v8 = vld [vmem:[#allocation5 + $0x28] sm:$0xff] }
  0x1e   :  { %v2060_v2 = vld [vmem:[#allocation5 + $0xb8] sm:$0xff]  ;;  %668 = vmatpush.bf16.msra.mxu1 %v2052_v1  ;;  %v2059_v6 = vld [vmem:[#allocation5 + $0xb0] sm:$0xff]  ;;  %v2050_v9 = vld [vmem:[#allocation5 + $0x68] sm:$0xff] }
  0x1f   :  { %v2068_v3 = vld [vmem:[#allocation5 + $0xf8] sm:$0xff]  ;;  %681 = vmatpush.bf16.msra.mxu2 %v2060_v2  ;;  %v2067_v7 = vld [vmem:[#allocation5 + $0xf0] sm:$0xff]  ;;  %v2058_v10 = vld [vmem:[#allocation5 + $0xa8] sm:$0xff] }
  0x20   :  { %694 = vmatpush.bf16.msra.mxu3 %v2068_v3  ;;  %v2066_v11 = vld [vmem:[#allocation5 + $0xe8] sm:$0xff]  ;;  %v2041_v12 = vld [vmem:[#allocation5 + $0x20] sm:$0xff]  ;;  %v2040_v16 = vld [vmem:[#allocation5 + $0x18] sm:$0xff] }
  0x21   :  { %656 = vmatpush.bf16.msra.mxu0 %v2043_v4  ;;  %v2049_v13 = vld [vmem:[#allocation5 + $0x60] sm:$0xff]  ;;  %v2048_v17 = vld [vmem:[#allocation5 + $0x58] sm:$0xff]  ;;  %v2039_v20 = vld [vmem:[#allocation5 + $0x10] sm:$0xff] }
  0x22   :  { %669 = vmatpush.bf16.msra.mxu1 %v2051_v5  ;;  %v2057_v14 = vld [vmem:[#allocation5 + $0xa0] sm:$0xff]  ;;  %v2056_v18 = vld [vmem:[#allocation5 + $0x98] sm:$0xff]  ;;  %v2047_v21 = vld [vmem:[#allocation5 + $0x50] sm:$0xff] }
  0x23   :  { %682 = vmatpush.bf16.msra.mxu2 %v2059_v6  ;;  %v2065_v15 = vld [vmem:[#allocation5 + $0xe0] sm:$0xff]  ;;  %v2064_v19 = vld [vmem:[#allocation5 + $0xd8] sm:$0xff]  ;;  %v2055_v22 = vld [vmem:[#allocation5 + $0x90] sm:$0xff] }
  0x24   :  { %695 = vmatpush.bf16.msra.mxu3 %v2067_v7  ;;  %v2063_v23 = vld [vmem:[#allocation5 + $0xd0] sm:$0xff]  ;;  %v2038_v24 = vld [vmem:[#allocation5 + $0x8] sm:$0xff]  ;;  %v2037_v28 = vld [vmem:[#allocation5] sm:$0xff] }
  0x25   :  { %657 = vmatpush.bf16.msra.mxu0 %v2042_v8  ;;  %v2046_v25 = vld [vmem:[#allocation5 + $0x48] sm:$0xff]  ;;  %v2045_v29 = vld [vmem:[#allocation5 + $0x40] sm:$0xff]  ;;  %v2076_v32 = vld [vmem:[#allocation5 + $0x138] sm:$0xff] }
  0x26   :  { %670 = vmatpush.bf16.msra.mxu1 %v2050_v9  ;;  %v2054_v26 = vld [vmem:[#allocation5 + $0x88] sm:$0xff]  ;;  %v2053_v30 = vld [vmem:[#allocation5 + $0x80] sm:$0xff]  ;;  %v125_v33 = vld [vmem:[#allocation2 + $0x10] sm:$0xff] }
  0x27   :  { %683 = vmatpush.bf16.msra.mxu2 %v2058_v10  ;;  %v2062_v27 = vld [vmem:[#allocation5 + $0xc8] sm:$0xff]  ;;  %v2061_v31 = vld [vmem:[#allocation5 + $0xc0] sm:$0xff]  ;;  %v2084_v35 = vld [vmem:[#allocation5 + $0x178] sm:$0xff]  ;;  %v262_v40 = vpack.c.bf16 %v125_v33, %v125_v33 }
  0x28   :  { %696 = vmatpush.bf16.msra.mxu3 %v2066_v11  ;;  %v123_v34 = vld [vmem:[#allocation2] sm:$0xff]  ;;  %v126_v36 = vld [vmem:[#allocation2 + $0x18] sm:$0xff]  ;;  %v124_v37 = vld [vmem:[#allocation2 + $0x8] sm:$0xff] }
  0x29   :  { %658 = vmatpush.bf16.msra.mxu0 %v2041_v12  ;;  %v2092_v38 = vld [vmem:[#allocation5 + $0x1b8] sm:$0xff]  ;;  %v260_v41 = vpack.c.bf16 %v123_v34, %v123_v34  ;;  %v263_v42 = vpack.c.bf16 %v126_v36, %v126_v36  ;;  %v261_v43 = vpack.c.bf16 %v124_v37, %v124_v37  ;;  %v2075_v44 = vld [vmem:[#allocation5 + $0x130] sm:$0xff]  ;;  %v2074_v48 = vld [vmem:[#allocation5 + $0x128] sm:$0xff] }
  0x2a   :  { %671 = vmatpush.bf16.msra.mxu1 %v2049_v13  ;;  %v2100_v39 = vld [vmem:[#allocation5 + $0x1f8] sm:$0xff]  ;;  %v2083_v45 = vld [vmem:[#allocation5 + $0x170] sm:$0xff]  ;;  %v2082_v49 = vld [vmem:[#allocation5 + $0x168] sm:$0xff] }
  0x2b   :  { %684 = vmatpush.bf16.msra.mxu2 %v2057_v14  ;;  %v2091_v46 = vld [vmem:[#allocation5 + $0x1b0] sm:$0xff]  ;;  %v2090_v50 = vld [vmem:[#allocation5 + $0x1a8] sm:$0xff]  ;;  %v2073_v52 = vld [vmem:[#allocation5 + $0x120] sm:$0xff] }
  0x2c   :  { %697 = vmatpush.bf16.msra.mxu3 %v2065_v15  ;;  %v2099_v47 = vld [vmem:[#allocation5 + $0x1f0] sm:$0xff]  ;;  %v2098_v51 = vld [vmem:[#allocation5 + $0x1e8] sm:$0xff]  ;;  %v2081_v53 = vld [vmem:[#allocation5 + $0x160] sm:$0xff] }
  0x2d   :  { %659 = vmatpush.bf16.msra.mxu0 %v2040_v16  ;;  %v2089_v54 = vld [vmem:[#allocation5 + $0x1a0] sm:$0xff]  ;;  %v2072_v56 = vld [vmem:[#allocation5 + $0x118] sm:$0xff]  ;;  %v2071_v60 = vld [vmem:[#allocation5 + $0x110] sm:$0xff] }
  0x2e   :  { %672 = vmatpush.bf16.msra.mxu1 %v2048_v17  ;;  %v2097_v55 = vld [vmem:[#allocation5 + $0x1e0] sm:$0xff]  ;;  %v2080_v57 = vld [vmem:[#allocation5 + $0x158] sm:$0xff]  ;;  %v2079_v61 = vld [vmem:[#allocation5 + $0x150] sm:$0xff] }
  0x2f   :  { %685 = vmatpush.bf16.msra.mxu2 %v2056_v18  ;;  %v2088_v58 = vld [vmem:[#allocation5 + $0x198] sm:$0xff]  ;;  %v2087_v62 = vld [vmem:[#allocation5 + $0x190] sm:$0xff]  ;;  %v2070_v0 = vld [vmem:[#allocation5 + $0x108] sm:$0xff] }
  0x30   :  { %698 = vmatpush.bf16.msra.mxu3 %v2064_v19  ;;  %v2096_v59 = vld [vmem:[#allocation5 + $0x1d8] sm:$0xff]  ;;  %v2095_v63 = vld [vmem:[#allocation5 + $0x1d0] sm:$0xff]  ;;  %v2078_v1 = vld [vmem:[#allocation5 + $0x148] sm:$0xff] }
  0x31   :  { %660 = vmatpush.bf16.msra.mxu0 %v2039_v20  ;;  %v2086_v2 = vld [vmem:[#allocation5 + $0x188] sm:$0xff]  ;;  %v2069_v4 = vld [vmem:[#allocation5 + $0x100] sm:$0xff]  ;;  %v129_v10 = vld [vmem:[#allocation2 + $0x30] sm:$0xff] }
  0x32   :  { %673 = vmatpush.bf16.msra.mxu1 %v2047_v21  ;;  %v2094_v3 = vld [vmem:[#allocation5 + $0x1c8] sm:$0xff]  ;;  %v2077_v5 = vld [vmem:[#allocation5 + $0x140] sm:$0xff]  ;;  %v130_v11 = vld [vmem:[#allocation2 + $0x38] sm:$0xff]  ;;  %v266_v14 = vpack.c.bf16 %v129_v10, %v129_v10 }
  0x33   :  { %686 = vmatpush.bf16.msra.mxu2 %v2055_v22  ;;  %v2085_v6 = vld [vmem:[#allocation5 + $0x180] sm:$0xff]  ;;  %v128_v8 = vld [vmem:[#allocation2 + $0x28] sm:$0xff]  ;;  %v267_v15 = vpack.c.bf16 %v130_v11, %v130_v11  ;;  %v2108_v16 = vld [vmem:[#allocation7 + $0x38] sm:$0xff] }
  0x34   :  { %699 = vmatpush.bf16.msra.mxu3 %v2063_v23  ;;  %v127_v7 = vld [vmem:[#allocation2 + $0x20] sm:$0xff]  ;;  %v265_v13 = vpack.c.bf16 %v128_v8, %v128_v8  ;;  %v2107_v17 = vld [vmem:[#allocation7 + $0x30] sm:$0xff]  ;;  %v2106_v18 = vld [vmem:[#allocation7 + $0x28] sm:$0xff] }
  0x35   :  { %661 = vmatpush.bf16.msra.mxu0 %v2038_v24  ;;  %v2093_v9 = vld [vmem:[#allocation5 + $0x1c0] sm:$0xff]  ;;  %v264_v12 = vpack.c.bf16 %v127_v7, %v127_v7  ;;  %v2104_v20 = vld [vmem:[#allocation7 + $0x18] sm:$0xff]  ;;  %v2103_v22 = vld [vmem:[#allocation7 + $0x10] sm:$0xff] }
  0x36   :  { %674 = vmatpush.bf16.msra.mxu1 %v2046_v25  ;;  %v2105_v19 = vld [vmem:[#allocation7 + $0x20] sm:$0xff]  ;;  %v2102_v24 = vld [vmem:[#allocation7 + $0x8] sm:$0xff]  ;;  %v2115_v34 = vld [vmem:[#allocation8 + $0x30] sm:$0xff] }
  0x37   :  { %687 = vmatpush.bf16.msra.mxu2 %v2054_v26  ;;  %v2114_v36 = vld [vmem:[#allocation8 + $0x28] sm:$0xff]  ;;  %v2169_v8 = vld [vmem:[#allocation10 + $0x19c] sm:$0xf0]  ;;  %v1977_v10 = vld [vmem:[#allocation10 + $0x1a0] sm:$0xf0] }
  0x38   :  { %700 = vmatpush.bf16.msra.mxu3 %v2062_v27 }
  0x39   :  { %662 = vmatpush.bf16.msra.mxu0 %v2037_v28  ;;  %v2101_v28 = vld [vmem:[#allocation7] sm:$0xff] }
  0x3a   :  { %675 = vmatpush.bf16.msra.mxu1 %v2045_v29 }
  0x3b   :  { %688 = vmatpush.bf16.msra.mxu2 %v2053_v30  ;;  %v2192_v30 = vld [vmem:[%s2466_s2] ss:$0 sm:$0xff] }
  0x3c   :  { %701 = vmatpush.bf16.msra.mxu3 %v2061_v31  ;;  %663 = vmatmul.bf16.vlgmr.msra.gmra.mxu0 %v260_v41  ;;  %v2116_v31 = vld [vmem:[#allocation8 + $0x38] sm:$0xff] }
  0x3d   :  { %707 = vmatpush.bf16.msrb.mxu0 %v2076_v32  ;;  %676 = vmatmul.bf16.vlgmr.msra.gmra.mxu1 %v261_v43 }
  0x3e   :  { %720 = vmatpush.bf16.msrb.mxu1 %v2084_v35  ;;  %689 = vmatmul.bf16.vlgmr.msra.gmra.mxu2 %v262_v40  ;;  %v2112_v40 = vld [vmem:[#allocation8 + $0x18] sm:$0xff] }
  0x3f   :  { %733 = vmatpush.bf16.msrb.mxu2 %v2092_v38  ;;  %702 = vmatmul.bf16.vlgmr.msra.gmra.mxu3 %v263_v42  ;;  %v2113_v38 = vld [vmem:[#allocation8 + $0x20] sm:$0xff] }
  0x40   :  { %746 = vmatpush.bf16.msrb.mxu3 %v2100_v39 }
  0x41   :  { %708 = vmatpush.bf16.msrb.mxu0 %v2075_v44 }
  0x42   :  { %721 = vmatpush.bf16.msrb.mxu1 %v2083_v45  ;;  %v2111_v45 = vld [vmem:[#allocation8 + $0x10] sm:$0xff] }
  0x43   :  { %734 = vmatpush.bf16.msrb.mxu2 %v2091_v46 }
  0x44   :  { %747 = vmatpush.bf16.msrb.mxu3 %v2099_v47 }
  0x45   :  { %709 = vmatpush.bf16.msrb.mxu0 %v2074_v48 }
  0x46   :  { %722 = vmatpush.bf16.msrb.mxu1 %v2082_v49 }
  0x47   :  { %735 = vmatpush.bf16.msrb.mxu2 %v2090_v50 }
  0x48   :  { %748 = vmatpush.bf16.msrb.mxu3 %v2098_v51 }
  0x49   :  { %710 = vmatpush.bf16.msrb.mxu0 %v2073_v52 }
  0x4a   :  { %723 = vmatpush.bf16.msrb.mxu1 %v2081_v53 }
  0x4b   :  { %736 = vmatpush.bf16.msrb.mxu2 %v2089_v54 }
  0x4c   :  { %749 = vmatpush.bf16.msrb.mxu3 %v2097_v55 }
  0x4d   :  { %711 = vmatpush.bf16.msrb.mxu0 %v2072_v56 }
  0x4e   :  { %724 = vmatpush.bf16.msrb.mxu1 %v2080_v57  ;;  %v2110_v57 = vld [vmem:[#allocation8 + $0x8] sm:$0xff] }
  0x4f   :  { %737 = vmatpush.bf16.msrb.mxu2 %v2088_v58  ;;  %v2109_v58 = vld [vmem:[#allocation8] sm:$0xff] }
  0x50   :  { %750 = vmatpush.bf16.msrb.mxu3 %v2096_v59  ;;  %v2007_v59 = vld [vmem:[#allocation10 + $0x1c0] sm:$0xf] }
  0x51   :  { %712 = vmatpush.bf16.msrb.mxu0 %v2071_v60  ;;  %v2177_v60 = vld [vmem:[#allocation10 + $0x1dc] sm:$0xf0] }
  0x52   :  { %725 = vmatpush.bf16.msrb.mxu1 %v2079_v61  ;;  %v2173_v61 = vld [vmem:[#allocation10 + $0x1c4] sm:$0xf] }
  0x53   :  { %738 = vmatpush.bf16.msrb.mxu2 %v2087_v62  ;;  %v2008_v62 = vor.u32 %v2177_v60, %v2007_v59  ;;  %v1855_v59 = vld [vmem:[#allocation10 + $0x88] sm:$0xf] }
  0x54   :  { %751 = vmatpush.bf16.msrb.mxu3 %v2095_v63  ;;  %v2009_v63 = vld [vmem:[#allocation10 + $0x1e0] sm:$0xf0]  ;;  %v2138_v60 = vld [vmem:[#allocation10 + $0xa4] sm:$0xf0] }
  0x55   :  { %713 = vmatpush.bf16.msrb.mxu0 %v2070_v0  ;;  %v2015_v0 = vld [vmem:[#allocation10 + $0x1c8] sm:$0xf] }
  0x56   :  { %726 = vmatpush.bf16.msrb.mxu1 %v2078_v1  ;;  %v2178_v1 = vld [vmem:[#allocation10 + $0x1e4] sm:$0xf0] }
  0x57   :  { %739 = vmatpush.bf16.msrb.mxu2 %v2086_v2  ;;  %v2012_v2 = vor.u32 %v2173_v61, %v2009_v63  ;;  %v2134_v61 = vld [vmem:[#allocation10 + $0x8c] sm:$0xf]  ;;  %v2193_v63 = vld [vmem:[%s2468_s4] ss:$0 sm:$0xff] }
  0x58   :  { %752 = vmatpush.bf16.msrb.mxu3 %v2094_v3  ;;  %v2016_v3 = vor.u32 %v2178_v1, %v2015_v0 }
  0x59   :  { %714 = vmatpush.bf16.msrb.mxu0 %v2069_v4  ;;  %v2174_v4 = vld [vmem:[#allocation10 + $0x1cc] sm:$0xf] }
  0x5a   :  { %727 = vmatpush.bf16.msrb.mxu1 %v2077_v5  ;;  %v2017_v5 = vld [vmem:[#allocation10 + $0x1e8] sm:$0xf0] }
  0x5b   :  { %740 = vmatpush.bf16.msrb.mxu2 %v2085_v6  ;;  %v1975_v6 = vld [vmem:[#allocation10 + $0x180] sm:$0xf]  ;;  %v2020_v7 = vor.u32 %v2174_v4, %v2017_v5  ;;  %v2125_v5 = vld [vmem:[#allocation10 + $0x44] sm:$0xf] }
  0x5c   :  { %753 = vmatpush.bf16.msrb.mxu3 %v2093_v9  ;;  %715 = vmatmul.bf16.vlgmr.msrb.gmra.mxu0 %v264_v12  ;;  %v2165_v9 = vld [vmem:[#allocation10 + $0x184] sm:$0xf]  ;;  %v1976_v11 = vor.u32 %v2169_v8, %v1975_v6  ;;  %v2129_v4 = vld [vmem:[#allocation10 + $0x5c] sm:$0xf0]  ;;  %v1823_v8 = vld [vmem:[#allocation10 + $0x48] sm:$0xf] }
  0x5d   :  { %728 = vmatmul.bf16.vlgmr.msrb.gmra.mxu1 %v265_v13  ;;  %829 = vmatpush.bf16.msra.mxu0 %v2108_v16  ;;  %v1980_v12 = vor.u32 %v2165_v9, %v1977_v10  ;;  %v1983_v13 = vld [vmem:[#allocation10 + $0x188] sm:$0xf]  ;;  %v2126_v10 = vld [vmem:[#allocation10 + $0x4c] sm:$0xf] }
  0x5e   :  { %741 = vmatmul.bf16.vlgmr.msrb.gmra.mxu2 %v266_v14  ;;  %912 = vmatpush.bf16.msra.mxu1 %v2116_v31  ;;  %v2170_v14 = vld [vmem:[#allocation10 + $0x1a4] sm:$0xf0]  ;;  %v2153_v31 = vld [vmem:[#allocation10 + $0x11c] sm:$0xf0] }
  0x5f   :  { %754 = vmatmul.bf16.vlgmr.msrb.gmra.mxu3 %v267_v15  ;;  %1329 = vmatpush.bf16.msra.mxu2 %v2008_v62  ;;  %v2166_v15 = vld [vmem:[#allocation10 + $0x18c] sm:$0xf]  ;;  %v1984_v16 = vor.u32 %v2170_v14, %v1983_v13  ;;  %v2130_v9 = vld [vmem:[#allocation10 + $0x64] sm:$0xf0]  ;;  %v1783_v13 = vld [vmem:[#allocation10] sm:$0xf] }
  0x60   :  { %1342 = vmatpush.bf16.msra.mxu3 %v2012_v2  ;;  %v1857_v62 = vld [vmem:[#allocation10 + $0xa8] sm:$0xf0]  ;;  %v1856_v2 = vor.u32 %v2138_v60, %v1855_v59  ;;  %v2121_v14 = vld [vmem:[#allocation10 + $0x1c] sm:$0xf0]  ;;  %v2159_v59 = vld [vmem:[#allocation10 + $0x154] sm:$0xf] }
  0x61   :  { %830 = vmatpush.bf16.msra.mxu0 %v2107_v17  ;;  %v1985_v17 = vld [vmem:[#allocation10 + $0x1a8] sm:$0xf0]  ;;  %v1860_v6 = vor.u32 %v2134_v61, %v1857_v62  ;;  %v1961_v61 = vld [vmem:[#allocation10 + $0x170] sm:$0xf0]  ;;  %v1967_v62 = vld [vmem:[#allocation10 + $0x158] sm:$0xf] }
  0x62   :  { %913 = vmatpush.bf16.msra.mxu1 %v2115_v34  ;;  %v1913_v34 = vld [vmem:[#allocation10 + $0x120] sm:$0xf0] }
  0x63   :  { %1330 = vmatpush.bf16.msra.mxu2 %v1976_v11  ;;  %v1825_v11 = vld [vmem:[#allocation10 + $0x68] sm:$0xf0] }
  0x64   :  { %1343 = vmatpush.bf16.msra.mxu3 %v1980_v12 }
  0x65   :  { %831 = vmatpush.bf16.msra.mxu0 %v2106_v18  ;;  %v1943_v18 = vld [vmem:[#allocation10 + $0x140] sm:$0xf] }
  0x66   :  { %914 = vmatpush.bf16.msra.mxu1 %v2114_v36  ;;  %v2154_v36 = vld [vmem:[#allocation10 + $0x124] sm:$0xf0] }
  0x69   :  { %832 = vmatpush.bf16.msra.mxu0 %v2105_v19  ;;  %v2161_v19 = vld [vmem:[#allocation10 + $0x15c] sm:$0xf0] }
  0x6a   :  { %915 = vmatpush.bf16.msra.mxu1 %v2113_v38  ;;  %v1921_v38 = vld [vmem:[#allocation10 + $0x128] sm:$0xf0] }
  0x6d   :  { %833 = vmatpush.bf16.msra.mxu0 %v2104_v20  ;;  %v1988_v20 = vor.u32 %v2166_v15, %v1985_v17  ;;  %v2117_v15 = vld [vmem:[#allocation10 + $0x4] sm:$0xf] }
  0x6e   :  { %916 = vmatpush.bf16.msra.mxu1 %v2112_v40 }
  0x71   :  { %834 = vmatpush.bf16.msra.mxu0 %v2103_v22  ;;  %v1945_v22 = vld [vmem:[#allocation10 + $0x160] sm:$0xf0] }
  0x72   :  { %917 = vmatpush.bf16.msra.mxu1 %v2111_v45 }
  0x75   :  { %835 = vmatpush.bf16.msra.mxu0 %v2102_v24  ;;  %v1944_v24 = vor.u32 %v2161_v19, %v1943_v18  ;;  %v1824_v18 = vor.u32 %v2130_v9, %v1823_v8  ;;  %v1785_v19 = vld [vmem:[#allocation10 + $0x20] sm:$0xf0]  ;;  %v1929_v9 = vld [vmem:[#allocation10 + $0x130] sm:$0xf0] }
  0x76   :  { %918 = vmatpush.bf16.msra.mxu1 %v2110_v57 }
  0x77   :  { %1331 = vmatpush.bf16.msra.mxu2 %v1944_v24  ;;  %v2118_v24 = vld [vmem:[#allocation10 + $0xc] sm:$0xf] }
  0x79   :  { %836 = vmatpush.bf16.msra.mxu0 %v2101_v28 }
  0x7a   :  { %919 = vmatpush.bf16.msra.mxu1 %v2109_v58  ;;  %v1849_v58 = vld [vmem:[#allocation10 + $0xa0] sm:$0xf0] }
  0x7d   :  { %1355 = vmatpush.bf16.msrb.mxu0 %v2016_v3  ;;  %v1815_v3 = vld [vmem:[#allocation10 + $0x40] sm:$0xf] }
  0x7e   :  { %1368 = vmatpush.bf16.msrb.mxu1 %v2020_v7  ;;  %v1817_v7 = vld [vmem:[#allocation10 + $0x60] sm:$0xf0]  ;;  %v1816_v12 = vor.u32 %v2129_v4, %v1815_v3  ;;  %v1969_v3 = vld [vmem:[#allocation10 + $0x178] sm:$0xf0] }
  0x7f   :  { %v1820_v17 = vor.u32 %v2125_v5, %v1817_v7  ;;  %v1927_v5 = vld [vmem:[#allocation10 + $0x110] sm:$0xf]  ;;  %v2151_v7 = vld [vmem:[#allocation10 + $0x114] sm:$0xf] }
  0x81   :  { %1356 = vmatpush.bf16.msrb.mxu0 %v1984_v16 }
  0x82   :  { %1369 = vmatpush.bf16.msrb.mxu1 %v1988_v20  ;;  %v1791_v20 = vld [vmem:[#allocation10 + $0x8] sm:$0xf] }
  0xb9   :  { %v664_v21 = vpop.f32.mrf.mxu0 }
  0xba   :  { %v677_v23 = vpop.f32.mrf.mxu1  ;;  %v665_v35 = vadd.f32 %v2192_v30, %v664_v21  ;;  %v2157_v21 = vld [vmem:[#allocation10 + $0x144] sm:$0xf]  ;;  %v1911_v30 = vld [vmem:[#allocation10 + $0x100] sm:$0xf] }
  0xbb   :  { %v1948_v28 = vor.u32 %v2157_v21, %v1945_v22  ;;  %v2122_v21 = vld [vmem:[#allocation10 + $0x24] sm:$0xf0] }
  0xbc   :  { %v678_v37 = vadd.f32 %v677_v23, %v665_v35  ;;  %v1951_v23 = vld [vmem:[#allocation10 + $0x148] sm:$0xf] }
  0xbd   :  { %v1919_v35 = vld [vmem:[#allocation10 + $0x108] sm:$0xf]  ;;  %1344 = vmatpush.bf16.msra.mxu3 %v1948_v28  ;;  %v2175_v28 = vld [vmem:[#allocation10 + $0x1d4] sm:$0xf] }
  0xc1   :  { %v690_v25 = vpop.f32.mrf.mxu2  ;;  %v666_v27 = vpop.f32.mrf.mxu0 }
  0xc2   :  { %v703_v26 = vpop.f32.mrf.mxu3  ;;  %v679_v29 = vpop.f32.mrf.mxu1  ;;  %v691_v39 = vadd.f32 %v690_v25, %v678_v37  ;;  %v2162_v25 = vld [vmem:[#allocation10 + $0x164] sm:$0xf0]  ;;  %v1953_v27 = vld [vmem:[#allocation10 + $0x168] sm:$0xf0] }
  0xc3   :  { %v1952_v29 = vor.u32 %v2162_v25, %v1951_v23  ;;  %v2150_v37 = vld [vmem:[#allocation10 + $0x10c] sm:$0xf]  ;;  %v1828_v23 = vor.u32 %v2126_v10, %v1825_v11  ;;  %v1935_v10 = vld [vmem:[#allocation10 + $0x118] sm:$0xf] }
  0xc4   :  { %v704_v41 = vadd.f32 %v703_v26, %v691_v39  ;;  %v2158_v26 = vld [vmem:[#allocation10 + $0x14c] sm:$0xf]  ;;  %v1912_v39 = vor.u32 %v2153_v31, %v1911_v30  ;;  %v1924_v45 = vor.u32 %v2150_v37, %v1921_v38  ;;  %v1784_v31 = vor.u32 %v2121_v14, %v1783_v13  ;;  %v2033_v37 = vld [vmem:[#allocation10 + $0x1f8] sm:$0xf0]  ;;  %v2156_v11 = vld [vmem:[#allocation10 + $0x134] sm:$0xf0] }
  0xc5   :  { %1357 = vmatpush.bf16.msrb.mxu0 %v1952_v29  ;;  %v1793_v25 = vld [vmem:[#allocation10 + $0x28] sm:$0xf0]  ;;  %v2025_v29 = vld [vmem:[#allocation10 + $0x1f0] sm:$0xf0]  ;;  %v1936_v13 = vor.u32 %v2156_v11, %v1935_v10  ;;  %v2152_v14 = vld [vmem:[#allocation10 + $0x11c] sm:$0xf] }
  0xc6   :  { %1332 = vmatpush.bf16.msra.mxu2 %v1912_v39  ;;  %v1796_v39 = vor.u32 %v2118_v24, %v1793_v25 }
  0xc9   :  { %v692_v32 = vpop.f32.mrf.mxu2 }
  0xca   :  { %v705_v33 = vpop.f32.mrf.mxu3  ;;  %v2149_v32 = vld [vmem:[#allocation10 + $0x104] sm:$0xf] }
  0xcb   :  { %v1956_v33 = vor.u32 %v2158_v26, %v1953_v27  ;;  %v1916_v40 = vor.u32 %v2149_v32, %v1913_v34  ;;  %v2023_v26 = vld [vmem:[#allocation10 + $0x1d0] sm:$0xf]  ;;  %v2031_v32 = vld [vmem:[#allocation10 + $0x1d8] sm:$0xf]  ;;  %v1788_v34 = vor.u32 %v2117_v15, %v1785_v19  ;;  %v1937_v15 = vld [vmem:[#allocation10 + $0x138] sm:$0xf0] }
  0xcc   :  { %v2179_v27 = vld [vmem:[#allocation10 + $0x1ec] sm:$0xf0]  ;;  %v2143_v19 = vld [vmem:[#allocation10 + $0xd4] sm:$0xf] }
  0xcd   :  { %1370 = vmatpush.bf16.msrb.mxu1 %v1956_v33  ;;  %1345 = vmatpush.bf16.msra.mxu3 %v1916_v40  ;;  %v2180_v33 = vld [vmem:[#allocation10 + $0x1f4] sm:$0xf0]  ;;  %v2024_v40 = vor.u32 %v2179_v27, %v2023_v26  ;;  %v2144_v26 = vld [vmem:[#allocation10 + $0xdc] sm:$0xf] }
  0xce   :  { %v1905_v27 = vld [vmem:[#allocation10 + $0xf8] sm:$0xf0] }
  0xd1   :  { %1371 = vmatpush.bf16.msrb.mxu1 %v1924_v45  ;;  %v2167_v45 = vld [vmem:[#allocation10 + $0x194] sm:$0xf] }
  0xd9   :  { %v716_v42 = vpop.f32.mrf.mxu0 }
  0xda   :  { %v729_v43 = vpop.f32.mrf.mxu1  ;;  %v717_v44 = vadd.f32 %v716_v42, %v704_v41  ;;  %v1920_v41 = vor.u32 %v2154_v36, %v1919_v35  ;;  %v1879_v42 = vld [vmem:[#allocation10 + $0xc0] sm:$0xf]  ;;  %v1792_v35 = vor.u32 %v2122_v21, %v1791_v20  ;;  %v2176_v36 = vld [vmem:[#allocation10 + $0x1dc] sm:$0xf]  ;;  %v1897_v21 = vld [vmem:[#allocation10 + $0xf0] sm:$0xf0] }
  0xdb   :  { %v1900_v24 = vor.u32 %v2143_v19, %v1897_v21 }
  0xdc   :  { %v730_v46 = vadd.f32 %v729_v43, %v717_v44  ;;  %v2145_v43 = vld [vmem:[#allocation10 + $0xdc] sm:$0xf0]  ;;  %v2141_v44 = vld [vmem:[#allocation10 + $0xc4] sm:$0xf]  ;;  %1358 = vmatpush.bf16.msrb.mxu0 %v1920_v41  ;;  %v2028_v41 = vor.u32 %v2175_v28, %v2025_v29  ;;  %v1863_v28 = vld [vmem:[#allocation10 + $0x90] sm:$0xf]  ;;  %v1908_v29 = vor.u32 %v2144_v26, %v1905_v27 }
  0xe1   :  { %v742_v47 = vpop.f32.mrf.mxu2  ;;  %v718_v50 = vpop.f32.mrf.mxu0 }
  0xe2   :  { %v755_v48 = vpop.f32.mrf.mxu3  ;;  %v743_v49 = vadd.f32 %v742_v47, %v730_v46  ;;  %v731_v51 = vpop.f32.mrf.mxu1  ;;  %v1881_v46 = vld [vmem:[#allocation10 + $0xe0] sm:$0xf0]  ;;  %v1887_v47 = vld [vmem:[#allocation10 + $0xc8] sm:$0xf]  ;;  %v1889_v50 = vld [vmem:[#allocation10 + $0xe8] sm:$0xf0] }
  0xe3   :  { %v1880_v51 = vor.u32 %v2145_v43, %v1879_v42  ;;  %v2032_v42 = vor.u32 %v2180_v33, %v2031_v32  ;;  %v1991_v43 = vld [vmem:[#allocation10 + $0x190] sm:$0xf]  ;;  %v1865_v32 = vld [vmem:[#allocation10 + $0xb0] sm:$0xf0] }
  0xe4   :  { %v756_v52 = vadd.f32 %v755_v48, %v743_v49  ;;  %v2146_v48 = vld [vmem:[#allocation10 + $0xe4] sm:$0xf0]  ;;  %v2142_v49 = vld [vmem:[#allocation10 + $0xcc] sm:$0xf] }
  0xe5   :  { %v1892_v57 = vor.u32 %v2142_v49, %v1889_v50  ;;  %1333 = vmatpush.bf16.msra.mxu2 %v1880_v51  ;;  %v2172_v49 = vld [vmem:[#allocation10 + $0x1b4] sm:$0xf0]  ;;  %v2168_v51 = vld [vmem:[#allocation10 + $0x19c] sm:$0xf] }
  0xe6   :  { %v759_v53 = vmax.f32 %v756_v52, 0.0  ;;  %v1884_v52 = vor.u32 %v2141_v44, %v1881_v46  ;;  %v2171_v44 = vld [vmem:[#allocation10 + $0x1ac] sm:$0xf0]  ;;  %v2036_v46 = vor.u32 %v2176_v36, %v2033_v37  ;;  %v2140_v36 = vld [vmem:[#allocation10 + $0xb4] sm:$0xf0] }
  0xe7   :  { %1372 = vmatpush.bf16.msrb.mxu1 %v1892_v57  ;;  %v1959_v57 = vld [vmem:[#allocation10 + $0x150] sm:$0xf]  ;;  %v2136_v37 = vld [vmem:[#allocation10 + $0x9c] sm:$0xf] }
  0xe8   :  { %v777_v54 = vpack.c.bf16 %v759_v53, %v759_v53  ;;  %v1888_v53 = vor.u32 %v2146_v48, %v1887_v47  ;;  %1346 = vmatpush.bf16.msra.mxu3 %v1884_v52  ;;  %v1993_v47 = vld [vmem:[#allocation10 + $0x1b0] sm:$0xf0]  ;;  %v1999_v48 = vld [vmem:[#allocation10 + $0x198] sm:$0xf]  ;;  %v2001_v52 = vld [vmem:[#allocation10 + $0x1b8] sm:$0xf0] }
  0xe9   :  { %v744_v55 = vpop.f32.mrf.mxu2 }
  0xea   :  { %v757_v56 = vpop.f32.mrf.mxu3  ;;  %837 = vmatmul.bf16.vlgmr.msra.gmra.mxu0 %v777_v54  ;;  %v1847_v54 = vld [vmem:[#allocation10 + $0x80] sm:$0xf] }
  0xeb   :  { %v2137_v55 = vld [vmem:[#allocation10 + $0x9c] sm:$0xf0]  ;;  %v2133_v56 = vld [vmem:[#allocation10 + $0x84] sm:$0xf]  ;;  %1359 = vmatpush.bf16.msrb.mxu0 %v1888_v53  ;;  %1373 = vmatpush.bf16.msrb.mxu1 %v1860_v6  ;;  %v1992_v53 = vor.u32 %v2171_v44, %v1991_v43  ;;  %v2155_v6 = vld [vmem:[#allocation10 + $0x12c] sm:$0xf0] }
  0xec   :  { %v1848_v0 = vor.u32 %v2137_v55, %v1847_v54  ;;  %v1852_v1 = vor.u32 %v2133_v56, %v1849_v58  ;;  %v1996_v54 = vor.u32 %v2167_v45, %v1993_v47  ;;  %v2000_v55 = vor.u32 %v2172_v49, %v1999_v48  ;;  %v2163_v58 = vld [vmem:[#allocation10 + $0x16c] sm:$0xf0]  ;;  %v2127_v43 = vld [vmem:[#allocation10 + $0x54] sm:$0xf]  ;;  %v1839_v45 = vld [vmem:[#allocation10 + $0x58] sm:$0xf] }
  0xed   :  { %v2004_v56 = vor.u32 %v2168_v51, %v2001_v52  ;;  %v1960_v60 = vor.u32 %v2163_v58, %v1959_v57  ;;  %v1928_v8 = vor.u32 %v2155_v6, %v1927_v5  ;;  %v1833_v44 = vld [vmem:[#allocation10 + $0x70] sm:$0xf0]  ;;  %v2132_v47 = vld [vmem:[#allocation10 + $0x74] sm:$0xf0]  ;;  %v2128_v48 = vld [vmem:[#allocation10 + $0x5c] sm:$0xf] }
  0xee   :  { %1334 = vmatpush.bf16.msra.mxu2 %v1848_v0  ;;  %1347 = vmatpush.bf16.msra.mxu3 %v1852_v1  ;;  %v1964_v0 = vor.u32 %v2159_v59, %v1961_v61  ;;  %v1841_v49 = vld [vmem:[#allocation10 + $0x78] sm:$0xf0]  ;;  %v1840_v51 = vor.u32 %v2132_v47, %v1839_v45  ;;  %v1799_v52 = vld [vmem:[#allocation10 + $0x10] sm:$0xf]  ;;  %v1807_v57 = vld [vmem:[#allocation10 + $0x18] sm:$0xf] }
  0xef   :  { %1360 = vmatpush.bf16.msrb.mxu0 %v1856_v2  ;;  %1374 = vmatpush.bf16.msrb.mxu1 %v1828_v23  ;;  %v2160_v2 = vld [vmem:[#allocation10 + $0x15c] sm:$0xf]  ;;  %v2148_v23 = vld [vmem:[#allocation10 + $0xf4] sm:$0xf0] }
  0xf0   :  { %v1972_v4 = vor.u32 %v2160_v2, %v1969_v3  ;;  %v2124_v58 = vld [vmem:[#allocation10 + $0x34] sm:$0xf0]  ;;  %v2120_v59 = vld [vmem:[#allocation10 + $0x1c] sm:$0xf] }
  0xf2   :  { %1335 = vmatpush.bf16.msra.mxu2 %v1816_v12  ;;  %1348 = vmatpush.bf16.msra.mxu3 %v1820_v17  ;;  %v1932_v12 = vor.u32 %v2151_v7, %v1929_v9  ;;  %v1895_v17 = vld [vmem:[#allocation10 + $0xd0] sm:$0xf]  ;;  %v990_v7 = vld [vmem:[#allocation11] sm:$0xff] }
  0xf3   :  { %1361 = vmatpush.bf16.msrb.mxu0 %v1824_v18  ;;  %1375 = vmatpush.bf16.msrb.mxu1 %v1796_v39  ;;  %v2147_v18 = vld [vmem:[#allocation10 + $0xec] sm:$0xf0]  ;;  %v1873_v39 = vld [vmem:[#allocation10 + $0xb8] sm:$0xf0]  ;;  %v996_v9 = vperm.slane %v990_v7, 3 }
  0xf4   :  { %v1896_v20 = vor.u32 %v2147_v18, %v1895_v17 }
  0xf6   :  { %1336 = vmatpush.bf16.msra.mxu2 %v1784_v31  ;;  %1349 = vmatpush.bf16.msra.mxu3 %v1788_v34  ;;  %v2135_v31 = vld [vmem:[#allocation10 + $0x94] sm:$0xf] }
  0xf7   :  { %1362 = vmatpush.bf16.msrb.mxu0 %v1792_v35  ;;  %v1868_v34 = vor.u32 %v2135_v31, %v1865_v32  ;;  %v1871_v35 = vld [vmem:[#allocation10 + $0x98] sm:$0xf]  ;;  %v998_v31 = vperm.slane %v990_v7, 5 }
  0xfa   :  { %1381 = vmatpush.bf16.msrb.mxu2 %v2024_v40  ;;  %1394 = vmatpush.bf16.msrb.mxu3 %v2028_v41  ;;  %v1831_v40 = vld [vmem:[#allocation10 + $0x50] sm:$0xf] }
  0xfb   :  { %1407 = vmatpush.bf16.msra.mxu0 %v2032_v42  ;;  %v2131_v41 = vld [vmem:[#allocation10 + $0x6c] sm:$0xf0]  ;;  %v1876_v42 = vor.u32 %v2136_v37, %v1873_v39 }
  0xfe   :  { %1382 = vmatpush.bf16.msrb.mxu2 %v1992_v53  ;;  %1395 = vmatpush.bf16.msrb.mxu3 %v1996_v54  ;;  %v2123_v53 = vld [vmem:[#allocation10 + $0x2c] sm:$0xf0]  ;;  %v2119_v54 = vld [vmem:[#allocation10 + $0x14] sm:$0xf] }
  0xff   :  { %1408 = vmatpush.bf16.msra.mxu0 %v2000_v55  ;;  %v1844_v55 = vor.u32 %v2128_v48, %v1841_v49  ;;  %v1800_v61 = vor.u32 %v2123_v53, %v1799_v52 }
 0x102   :  { %1383 = vmatpush.bf16.msrb.mxu2 %v1960_v60  ;;  %1396 = vmatpush.bf16.msrb.mxu3 %v1964_v0  ;;  %v1809_v60 = vld [vmem:[#allocation10 + $0x38] sm:$0xf0] }
 0x103   :  { %v1812_v0 = vor.u32 %v2120_v59, %v1809_v60 }
 0x106   :  { %1384 = vmatpush.bf16.msrb.mxu2 %v1928_v8  ;;  %1397 = vmatpush.bf16.msrb.mxu3 %v1932_v12  ;;  %v995_v8 = vperm.slane %v990_v7, 2 }
 0x10a   :  { %1385 = vmatpush.bf16.msrb.mxu2 %v1896_v20  ;;  %1398 = vmatpush.bf16.msrb.mxu3 %v1900_v24  ;;  %v999_v24 = vperm.slane %v990_v7, 6 }
 0x10e   :  { %1399 = vmatpush.bf16.msrb.mxu3 %v1868_v34 }
 0x167   :  { %v838_v16 = vpop.f32.mrf.mxu0 }
 0x168   :  { %v839_v22 = vadd.f32 %v2193_v63, %v838_v16  ;;  %v2164_v63 = vld [vmem:[#allocation10 + $0x174] sm:$0xf0]  ;;  %v1940_v16 = vor.u32 %v2152_v14, %v1937_v15  ;;  %v993_v14 = vperm.slane %v990_v7, 0  ;;  %v994_v15 = vperm.slane %v990_v7, 1 }
 0x169   :  { %v1968_v1 = vor.u32 %v2164_v63, %v1967_v62  ;;  %v1808_v63 = vor.u32 %v2124_v58, %v1807_v57 }
 0x16a   :  { %v842_v30 = vmax.f32 %v839_v22, 0.0  ;;  %v1903_v22 = vld [vmem:[#allocation10 + $0xd8] sm:$0xf] }
 0x16b   :  { %1409 = vmatpush.bf16.msra.mxu0 %v1968_v1  ;;  %v1904_v25 = vor.u32 %v2148_v23, %v1903_v22  ;;  %v2194_v1 = vld [vmem:[%s2470_s6] ss:$0 sm:$0xff]  ;;  %s2383_s6 = smov [#allocation13]  }
 0x16c   :  { %v860_v38 = vpack.c.bf16 %v842_v30, %v842_v30  ;;  %v2139_v30 = vld [vmem:[#allocation10 + $0xac] sm:$0xf0]  ;;  %s1446_s20 = sshll.u32 %s2383_s6, 4  ;;  %s1447_s20 = int_to_ptr.vmem [resolvable:$true] %s1446_s20 }
 0x16d   :  { %v1864_v33 = vor.u32 %v2139_v30, %v1863_v28  ;;  %v997_v30 = vperm.slane %v990_v7, 4 }
 0x16e   :  { %920 = vmatmul.bf16.vlgmr.msra.gmra.mxu1 %v860_v38  ;;  %v1872_v38 = vor.u32 %v2140_v36, %v1871_v35 }
 0x16f   :  { %v840_v50 = vpop.f32.mrf.mxu0  ;;  %1420 = vmatpush.bf16.msra.mxu1 %v2036_v46  ;;  %1410 = vmatpush.bf16.msra.mxu0 %v1936_v13  ;;  %v1832_v46 = vor.u32 %v2131_v41, %v1831_v40 }
 0x170   :  { %1386 = vmatpush.bf16.msrb.mxu2 %v1864_v33  ;;  %v1836_v50 = vor.u32 %v2127_v43, %v1833_v44 }
 0x172   :  { %1400 = vmatpush.bf16.msrb.mxu3 %v1836_v50 }
 0x173   :  { %1421 = vmatpush.bf16.msra.mxu1 %v2004_v56  ;;  %1411 = vmatpush.bf16.msra.mxu0 %v1904_v25  ;;  %v1801_v56 = vld [vmem:[#allocation10 + $0x30] sm:$0xf0]  ;;  %v1000_v25 = vperm.slane %v990_v7, 7 }
 0x174   :  { %1387 = vmatpush.bf16.msrb.mxu2 %v1832_v46  ;;  %v1804_v62 = vor.u32 %v2119_v54, %v1801_v56 }
 0x176   :  { %1401 = vmatpush.bf16.msrb.mxu3 %v1804_v62 }
 0x177   :  { %1422 = vmatpush.bf16.msra.mxu1 %v1972_v4  ;;  %1412 = vmatpush.bf16.msra.mxu0 %v1872_v38 }
 0x178   :  { %1388 = vmatpush.bf16.msrb.mxu2 %v1800_v61 }
 0x17b   :  { %1423 = vmatpush.bf16.msra.mxu1 %v1940_v16  ;;  %1413 = vmatpush.bf16.msra.mxu0 %v1840_v51 }
 0x17f   :  { %1424 = vmatpush.bf16.msra.mxu1 %v1908_v29  ;;  %1414 = vmatpush.bf16.msra.mxu0 %v1808_v63 }
 0x183   :  { %1425 = vmatpush.bf16.msra.mxu1 %v1876_v42 }
 0x187   :  { %1426 = vmatpush.bf16.msra.mxu1 %v1844_v55 }
 0x18b   :  { %1427 = vmatpush.bf16.msra.mxu1 %v1812_v0 }
 0x1eb   :  { %v921_v2 = vpop.f32.mrf.mxu1 }
 0x1ec   :  { %v922_v3 = vadd.f32 %v2194_v1, %v921_v2 }
 0x1ee   :  { %v925_v4 = vmax.f32 %v922_v3, 0.0 }
 0x1f0   :  { %v991_v5 = vpack.c.bf16 %v925_v4, %v925_v4 }
 0x1f2   :  { %1337 = vmatmul.bf16.vlgmr.msra.gmra.mxu2 %v991_v5  ;;  %1350 = vmatmul.bf16.vlgmr.msra.gmra.mxu3 %v991_v5 }
 0x1f3   :  { %1363 = vmatmul.bf16.vlgmr.msrb.gmra.mxu0 %v991_v5  ;;  %1376 = vmatmul.bf16.vlgmr.msrb.gmra.mxu1 %v991_v5  ;;  %v923_v6 = vpop.f32.mrf.mxu1 }
 0x202   :  { %1389 = vmatmul.bf16.vlgmr.msrb.gmra.mxu2 %v991_v5  ;;  %1402 = vmatmul.bf16.vlgmr.msrb.gmra.mxu3 %v991_v5 }
 0x203   :  { %1415 = vmatmul.bf16.vlgmr.msra.gmra.mxu0 %v991_v5  ;;  %1428 = vmatmul.bf16.vlgmr.msra.gmra.mxu1 %v991_v5 }
 0x270   :  { %v1364_v10 = vpop.f32.mrf.mxu0  ;;  %v1377_v11 = vpop.f32.mrf.mxu1 }
 0x271   :  { %v1365_v12 = vadd.f32 %v1364_v10, %v995_v8  ;;  %v1378_v13 = vadd.f32 %v1377_v11, %v996_v9 }
 0x273   :  { %1435 = vst [vmem:[#allocation13 + $0x10] sm:$0xff] %v1365_v12 }
 0x274   :  { %1436 = vst [vmem:[#allocation13 + $0x18] sm:$0xff] %v1378_v13 }
 0x275   :  { %v1338_v16 = vpop.f32.mrf.mxu2  ;;  %v1351_v17 = vpop.f32.mrf.mxu3 }
 0x276   :  { %v1339_v18 = vadd.f32 %v1338_v16, %v993_v14  ;;  %v1352_v19 = vadd.f32 %v1351_v17, %v994_v15 }
 0x278   :  { %1433 = vst [vmem:[#allocation13] sm:$0xff] %v1339_v18  ;;  %v1366_v20 = vpop.f32.mrf.mxu0  ;;  %v1379_v21 = vpop.f32.mrf.mxu1 }
 0x279   :  { %1434 = vst [vmem:[#allocation13 + $0x8] sm:$0xff] %v1352_v19 }
 0x27d   :  { %v1340_v22 = vpop.f32.mrf.mxu2  ;;  %v1353_v23 = vpop.f32.mrf.mxu3 }
 0x280   :  { %v1416_v26 = vpop.f32.mrf.mxu0  ;;  %v1429_v27 = vpop.f32.mrf.mxu1 }
 0x281   :  { %v1417_v28 = vadd.f32 %v1416_v26, %v999_v24  ;;  %v1430_v29 = vadd.f32 %v1429_v27, %v1000_v25 }
 0x283   :  { %1439 = vst [vmem:[#allocation13 + $0x30] sm:$0xff] %v1417_v28 }
 0x284   :  { %1440 = vst [vmem:[#allocation13 + $0x38] sm:$0xff] %v1430_v29 }
 0x285   :  { %v1390_v32 = vpop.f32.mrf.mxu2  ;;  %v1403_v33 = vpop.f32.mrf.mxu3 }
 0x286   :  { %v1391_v34 = vadd.f32 %v1390_v32, %v997_v30  ;;  %v1404_v35 = vadd.f32 %v1403_v33, %v998_v31 }
 0x288   :  { %1437 = vst [vmem:[#allocation13 + $0x20] sm:$0xff] %v1391_v34  ;;  %v1418_v36 = vpop.f32.mrf.mxu0  ;;  %v1431_v37 = vpop.f32.mrf.mxu1 }
 0x289   :  { %1438 = vst [vmem:[#allocation13 + $0x28] sm:$0xff] %v1404_v35 }
 0x28a   :  { %1451 = dma.vmem_to_hbm [thread:$0]  %s1447_s20, 1024, %s1449_s23, [#allocation4]  }
 0x28d   :  { %v1392_v38 = vpop.f32.mrf.mxu2  ;;  %v1405_v39 = vpop.f32.mrf.mxu3 }
 0x28e   :  { %2371 = dma.done.wait [#allocation4], 1024  }
 0x28f   :  { %2372 = vsyncadd [#allocation4], 4294966272 }
 0x290   :  { %1456 = vsyncpa [#allocation3], 1 }
 0x291   :  { %1457 = vsyncpa [#allocation6], 1 }
 0x292   :  { %1458 = vsyncpa [#allocation9], 1 }
 0x293   :  { %1459 = vsyncpa [#allocation12], 1 }
 0x294   :  { %1460 = vsyncpa [#allocation4], 1 }

// kernel: tpu_custom_call.1
= control target key start
LH: loop header
LB: loop body
LE: loop exit
PB: predicated region body
PF: predicated region fallthrough
CT: control target
= control target key end

     0   :  { %14 = vsyncpa [#allocation3], 0  ;;  %s2464_s0 = inlined_call_operand.hbm [shape: f32[8,1024], index: 0, kind: input, shape index: {}]   ;;  %s2465_s1 = inlined_call_operand.hbm [shape: bf16[1024,128], index: 1, kind: input, shape index: {}]   ;;  %s2466_s2 = inlined_call_operand.vmem [shape: f32[1,128], index: 2, kind: input, shape index: {}]   ;;  %s2467_s3 = inlined_call_operand.hbm [shape: bf16[128,128], index: 3, kind: input, shape index: {}]   ;;  %s2468_s4 = inlined_call_operand.vmem [shape: f32[1,128], index: 4, kind: input, shape index: {}]   ;;  %s2469_s5 = inlined_call_operand.hbm [shape: bf16[128,128], index: 5, kind: input, shape index: {}]   ;;  %s2470_s6 = inlined_call_operand.vmem [shape: f32[1,128], index: 6, kind: input, shape index: {}]   ;;  %s2471_s7 = inlined_call_operand.hbm [shape: bf16[128,1024], index: 7, kind: input, shape index: {}]   ;;  %s2472_s8 = inlined_call_operand.hbm [shape: f32[1,1024], index: 8, kind: input, shape index: {}]   ;;  %s2473_s9 = inlined_call_operand.hbm [shape: f32[8,1024], index: 9, kind: output, shape index: {}]  }
   0x1   :  { %15 = vsyncpa [#allocation6], 0 }
   0x2   :  { %16 = vsyncpa [#allocation9], 0 }
   0x3   :  { %17 = vsyncpa [#allocation12], 0  ;;  %s34_s11 = sshll.u32 %s2465_s1, 4  ;;  %s35_s11 = int_to_ptr.hbm [resolvable:$true] %s34_s11 }
   0x4   :  { %18 = vsyncpa [#allocation4], 0  ;;  %s2373_s12 = smov [#allocation5]   ;;  %s64_s16 = sshll.u32 %s2469_s5, 4  ;;  %s65_s16 = int_to_ptr.hbm [resolvable:$true] %s64_s16 }
   0x5   :  { %s36_s13 = sshll.u32 %s2373_s12, 4  ;;  %s2374_s17 = smov 64   ;;  %s37_s13 = int_to_ptr.vmem [resolvable:$true] %s36_s13 }
   0x6   :  { %s2375_s18 = smov 4   ;;  %s2376_s19 = smov [#allocation8]  }
   0x7   :  { %42 = dma.hbm_to_vmem [thread:$0]  %s35_s11, 8192, %s37_s13, [#allocation6], %s2374_s17, %s2374_s17, %s2375_s18  }
   0x8   :  { %s66_s20 = sshll.u32 %s2376_s19, 4  ;;  %s24_s23 = sshll.u32 %s2464_s0, 4  ;;  %s67_s20 = int_to_ptr.vmem [resolvable:$true] %s66_s20  ;;  %s25_s23 = int_to_ptr.hbm [resolvable:$true] %s24_s23 }
   0x9   :  { %72 = dma.hbm_to_vmem [thread:$0]  %s65_s16, 1024, %s67_s20, [#allocation9], %s2374_s17, %s2374_s17, %s2375_s18  }
   0xa   :  { %s49_s25 = sshll.u32 %s2467_s3, 4  ;;  %s2377_s26 = smov [#allocation2]   ;;  %s50_s25 = int_to_ptr.hbm [resolvable:$true] %s49_s25 }
   0xb   :  { %s26_s27 = sshll.u32 %s2377_s26, 4  ;;  %s2378_s5 = smov [#allocation7]   ;;  %s27_s27 = int_to_ptr.vmem [resolvable:$true] %s26_s27 }
   0xc   :  { %29 = dma.hbm_to_vmem [thread:$0]  %s25_s23, 1024, %s27_s27, [#allocation3]  }
   0xd   :  { %s51_s28 = sshll.u32 %s2378_s5, 4  ;;  %s79_s10 = sshll.u32 %s2471_s7, 4  ;;  %s52_s28 = int_to_ptr.vmem [resolvable:$true] %s51_s28  ;;  %s80_s10 = int_to_ptr.hbm [resolvable:$true] %s79_s10 }
   0xe   :  { %57 = dma.hbm_to_vmem [thread:$0]  %s50_s25, 1024, %s52_s28, [#allocation6], %s2374_s17, %s2374_s17, %s2375_s18  }
   0xf   :  { %s2379_s0 = smov [#allocation10]   ;;  %s93_s3 = sshll.u32 %s2472_s8, 4  ;;  %s94_s3 = int_to_ptr.hbm [resolvable:$true] %s93_s3 }
  0x10   :  { %s81_s11 = sshll.u32 %s2379_s0, 4  ;;  %s2380_s14 = smov 512   ;;  %s82_s11 = int_to_ptr.vmem [resolvable:$true] %s81_s11 }
  0x11   :  { %s2381_s15 = smov 32   ;;  %s2382_s16 = smov [#allocation11]  }
  0x12   :  { %87 = dma.hbm_to_vmem [thread:$0]  %s80_s10, 8192, %s82_s11, [#allocation9], %s2380_s14, %s2380_s14, %s2381_s15  }
  0x13   :  { %s95_s19 = sshll.u32 %s2382_s16, 4  ;;  %s96_s19 = int_to_ptr.vmem [resolvable:$true] %s95_s19 }
  0x14   :  { %98 = dma.hbm_to_vmem [thread:$0]  %s94_s3, 128, %s96_s19, [#allocation12]  }
  0x15   :  { %2363 = dma.done.wait [#allocation3], 1024  }
  0x16   :  { %2364 = vsyncadd [#allocation3], 4294966272 }
  0x17   :  { %2365 = dma.done.wait [#allocation6], 9216  }
  0x18   :  { %2366 = vsyncadd [#allocation6], 4294958080 }
  0x19   :  { %2367 = dma.done.wait [#allocation9], 9216  }
  0x1a   :  { %2368 = vsyncadd [#allocation9], 4294958080 }
  0x1b   :  { %2369 = dma.done.wait [#allocation12], 128  }
  0x1c   :  { %2370 = vsyncadd [#allocation12], 4294967168  ;;  %v2044_v0 = vld [vmem:[#allocation5 + $0x38] sm:$0xff]  ;;  %v2043_v4 = vld [vmem:[#allocation5 + $0x30] sm:$0xff]  ;;  %s1448_s23 = sshll.u32 %s2473_s9, 4  ;;  %s1449_s23 = int_to_ptr.hbm [resolvable:$true] %s1448_s23 }
  0x1d   :  { %v2052_v1 = vld [vmem:[#allocation5 + $0x78] sm:$0xff]  ;;  %655 = vmatpush.bf16.msra.mxu0 %v2044_v0  ;;  %v2051_v5 = vld [vmem:[#allocation5 + $0x70] sm:$0xff]  ;;  %v2042_v8 = vld [vmem:[#allocation5 + $0x28] sm:$0xff] }
  0x1e   :  { %v2060_v2 = vld [vmem:[#allocation5 + $0xb8] sm:$0xff]  ;;  %668 = vmatpush.bf16.msra.mxu1 %v2052_v1  ;;  %v2059_v6 = vld [vmem:[#allocation5 + $0xb0] sm:$0xff]  ;;  %v2050_v9 = vld [vmem:[#allocation5 + $0x68] sm:$0xff] }
  0x1f   :  { %v2068_v3 = vld [vmem:[#allocation5 + $0xf8] sm:$0xff]  ;;  %681 = vmatpush.bf16.msra.mxu2 %v2060_v2  ;;  %v2067_v7 = vld [vmem:[#allocation5 + $0xf0] sm:$0xff]  ;;  %v2058_v10 = vld [vmem:[#allocation5 + $0xa8] sm:$0xff] }
  0x20   :  { %694 = vmatpush.bf16.msra.mxu3 %v2068_v3  ;;  %v2066_v11 = vld [vmem:[#allocation5 + $0xe8] sm:$0xff]  ;;  %v2041_v12 = vld [vmem:[#allocation5 + $0x20] sm:$0xff]  ;;  %v2040_v16 = vld [vmem:[#allocation5 + $0x18] sm:$0xff] }
  0x21   :  { %656 = vmatpush.bf16.msra.mxu0 %v2043_v4  ;;  %v2049_v13 = vld [vmem:[#allocation5 + $0x60] sm:$0xff]  ;;  %v2048_v17 = vld [vmem:[#allocation5 + $0x58] sm:$0xff]  ;;  %v2039_v20 = vld [vmem:[#allocation5 + $0x10] sm:$0xff] }
  0x22   :  { %669 = vmatpush.bf16.msra.mxu1 %v2051_v5  ;;  %v2057_v14 = vld [vmem:[#allocation5 + $0xa0] sm:$0xff]  ;;  %v2056_v18 = vld [vmem:[#allocation5 + $0x98] sm:$0xff]  ;;  %v2047_v21 = vld [vmem:[#allocation5 + $0x50] sm:$0xff] }
  0x23   :  { %682 = vmatpush.bf16.msra.mxu2 %v2059_v6  ;;  %v2065_v15 = vld [vmem:[#allocation5 + $0xe0] sm:$0xff]  ;;  %v2064_v19 = vld [vmem:[#allocation5 + $0xd8] sm:$0xff]  ;;  %v2055_v22 = vld [vmem:[#allocation5 + $0x90] sm:$0xff] }
  0x24   :  { %695 = vmatpush.bf16.msra.mxu3 %v2067_v7  ;;  %v2063_v23 = vld [vmem:[#allocation5 + $0xd0] sm:$0xff]  ;;  %v2038_v24 = vld [vmem:[#allocation5 + $0x8] sm:$0xff]  ;;  %v2037_v28 = vld [vmem:[#allocation5] sm:$0xff] }
  0x25   :  { %657 = vmatpush.bf16.msra.mxu0 %v2042_v8  ;;  %v2046_v25 = vld [vmem:[#allocation5 + $0x48] sm:$0xff]  ;;  %v2045_v29 = vld [vmem:[#allocation5 + $0x40] sm:$0xff]  ;;  %v2076_v32 = vld [vmem:[#allocation5 + $0x138] sm:$0xff] }
  0x26   :  { %670 = vmatpush.bf16.msra.mxu1 %v2050_v9  ;;  %v2054_v26 = vld [vmem:[#allocation5 + $0x88] sm:$0xff]  ;;  %v2053_v30 = vld [vmem:[#allocation5 + $0x80] sm:$0xff]  ;;  %v125_v33 = vld [vmem:[#allocation2 + $0x10] sm:$0xff] }
  0x27   :  { %683 = vmatpush.bf16.msra.mxu2 %v2058_v10  ;;  %v2062_v27 = vld [vmem:[#allocation5 + $0xc8] sm:$0xff]  ;;  %v2061_v31 = vld [vmem:[#allocation5 + $0xc0] sm:$0xff]  ;;  %v2084_v35 = vld [vmem:[#allocation5 + $0x178] sm:$0xff]  ;;  %v262_v40 = vpack.c.bf16 %v125_v33, %v125_v33 }
  0x28   :  { %696 = vmatpush.bf16.msra.mxu3 %v2066_v11  ;;  %v123_v34 = vld [vmem:[#allocation2] sm:$0xff]  ;;  %v126_v36 = vld [vmem:[#allocation2 + $0x18] sm:$0xff]  ;;  %v124_v37 = vld [vmem:[#allocation2 + $0x8] sm:$0xff] }
  0x29   :  { %658 = vmatpush.bf16.msra.mxu0 %v2041_v12  ;;  %v2092_v38 = vld [vmem:[#allocation5 + $0x1b8] sm:$0xff]  ;;  %v260_v41 = vpack.c.bf16 %v123_v34, %v123_v34  ;;  %v263_v42 = vpack.c.bf16 %v126_v36, %v126_v36  ;;  %v261_v43 = vpack.c.bf16 %v124_v37, %v124_v37  ;;  %v2075_v44 = vld [vmem:[#allocation5 + $0x130] sm:$0xff]  ;;  %v2074_v48 = vld [vmem:[#allocation5 + $0x128] sm:$0xff] }
  0x2a   :  { %671 = vmatpush.bf16.msra.mxu1 %v2049_v13  ;;  %v2100_v39 = vld [vmem:[#allocation5 + $0x1f8] sm:$0xff]  ;;  %v2083_v45 = vld [vmem:[#allocation5 + $0x170] sm:$0xff]  ;;  %v2082_v49 = vld [vmem:[#allocation5 + $0x168] sm:$0xff] }
  0x2b   :  { %684 = vmatpush.bf16.msra.mxu2 %v2057_v14  ;;  %v2091_v46 = vld [vmem:[#allocation5 + $0x1b0] sm:$0xff]  ;;  %v2090_v50 = vld [vmem:[#allocation5 + $0x1a8] sm:$0xff]  ;;  %v2073_v52 = vld [vmem:[#allocation5 + $0x120] sm:$0xff] }
  0x2c   :  { %697 = vmatpush.bf16.msra.mxu3 %v2065_v15  ;;  %v2099_v47 = vld [vmem:[#allocation5 + $0x1f0] sm:$0xff]  ;;  %v2098_v51 = vld [vmem:[#allocation5 + $0x1e8] sm:$0xff]  ;;  %v2081_v53 = vld [vmem:[#allocation5 + $0x160] sm:$0xff] }
  0x2d   :  { %659 = vmatpush.bf16.msra.mxu0 %v2040_v16  ;;  %v2089_v54 = vld [vmem:[#allocation5 + $0x1a0] sm:$0xff]  ;;  %v2072_v56 = vld [vmem:[#allocation5 + $0x118] sm:$0xff]  ;;  %v2071_v60 = vld [vmem:[#allocation5 + $0x110] sm:$0xff] }
  0x2e   :  { %672 = vmatpush.bf16.msra.mxu1 %v2048_v17  ;;  %v2097_v55 = vld [vmem:[#allocation5 + $0x1e0] sm:$0xff]  ;;  %v2080_v57 = vld [vmem:[#allocation5 + $0x158] sm:$0xff]  ;;  %v2079_v61 = vld [vmem:[#allocation5 + $0x150] sm:$0xff] }
  0x2f   :  { %685 = vmatpush.bf16.msra.mxu2 %v2056_v18  ;;  %v2088_v58 = vld [vmem:[#allocation5 + $0x198] sm:$0xff]  ;;  %v2087_v62 = vld [vmem:[#allocation5 + $0x190] sm:$0xff]  ;;  %v2070_v0 = vld [vmem:[#allocation5 + $0x108] sm:$0xff] }
  0x30   :  { %698 = vmatpush.bf16.msra.mxu3 %v2064_v19  ;;  %v2096_v59 = vld [vmem:[#allocation5 + $0x1d8] sm:$0xff]  ;;  %v2095_v63 = vld [vmem:[#allocation5 + $0x1d0] sm:$0xff]  ;;  %v2078_v1 = vld [vmem:[#allocation5 + $0x148] sm:$0xff] }
  0x31   :  { %660 = vmatpush.bf16.msra.mxu0 %v2039_v20  ;;  %v2086_v2 = vld [vmem:[#allocation5 + $0x188] sm:$0xff]  ;;  %v2069_v4 = vld [vmem:[#allocation5 + $0x100] sm:$0xff]  ;;  %v129_v10 = vld [vmem:[#allocation2 + $0x30] sm:$0xff] }
  0x32   :  { %673 = vmatpush.bf16.msra.mxu1 %v2047_v21  ;;  %v2094_v3 = vld [vmem:[#allocation5 + $0x1c8] sm:$0xff]  ;;  %v2077_v5 = vld [vmem:[#allocation5 + $0x140] sm:$0xff]  ;;  %v130_v11 = vld [vmem:[#allocation2 + $0x38] sm:$0xff]  ;;  %v266_v14 = vpack.c.bf16 %v129_v10, %v129_v10 }
  0x33   :  { %686 = vmatpush.bf16.msra.mxu2 %v2055_v22  ;;  %v2085_v6 = vld [vmem:[#allocation5 + $0x180] sm:$0xff]  ;;  %v128_v8 = vld [vmem:[#allocation2 + $0x28] sm:$0xff]  ;;  %v267_v15 = vpack.c.bf16 %v130_v11, %v130_v11  ;;  %v2108_v16 = vld [vmem:[#allocation7 + $0x38] sm:$0xff] }
  0x34   :  { %699 = vmatpush.bf16.msra.mxu3 %v2063_v23  ;;  %v127_v7 = vld [vmem:[#allocation2 + $0x20] sm:$0xff]  ;;  %v265_v13 = vpack.c.bf16 %v128_v8, %v128_v8  ;;  %v2107_v17 = vld [vmem:[#allocation7 + $0x30] sm:$0xff]  ;;  %v2106_v18 = vld [vmem:[#allocation7 + $0x28] sm:$0xff] }
  0x35   :  { %661 = vmatpush.bf16.msra.mxu0 %v2038_v24  ;;  %v2093_v9 = vld [vmem:[#allocation5 + $0x1c0] sm:$0xff]  ;;  %v264_v12 = vpack.c.bf16 %v127_v7, %v127_v7  ;;  %v2104_v20 = vld [vmem:[#allocation7 + $0x18] sm:$0xff]  ;;  %v2103_v22 = vld [vmem:[#allocation7 + $0x10] sm:$0xff] }
  0x36   :  { %674 = vmatpush.bf16.msra.mxu1 %v2046_v25  ;;  %v2105_v19 = vld [vmem:[#allocation7 + $0x20] sm:$0xff]  ;;  %v2102_v24 = vld [vmem:[#allocation7 + $0x8] sm:$0xff]  ;;  %v2115_v34 = vld [vmem:[#allocation8 + $0x30] sm:$0xff] }
  0x37   :  { %687 = vmatpush.bf16.msra.mxu2 %v2054_v26  ;;  %v2114_v36 = vld [vmem:[#allocation8 + $0x28] sm:$0xff]  ;;  %v2169_v8 = vld [vmem:[#allocation10 + $0x19c] sm:$0xf0]  ;;  %v1977_v10 = vld [vmem:[#allocation10 + $0x1a0] sm:$0xf0] }
  0x38   :  { %700 = vmatpush.bf16.msra.mxu3 %v2062_v27 }
  0x39   :  { %662 = vmatpush.bf16.msra.mxu0 %v2037_v28  ;;  %v2101_v28 = vld [vmem:[#allocation7] sm:$0xff] }
  0x3a   :  { %675 = vmatpush.bf16.msra.mxu1 %v2045_v29 }
  0x3b   :  { %688 = vmatpush.bf16.msra.mxu2 %v2053_v30  ;;  %v2192_v30 = vld [vmem:[%s2466_s2] ss:$0 sm:$0xff] }
  0x3c   :  { %701 = vmatpush.bf16.msra.mxu3 %v2061_v31  ;;  %663 = vmatmul.bf16.vlgmr.msra.gmra.mxu0 %v260_v41  ;;  %v2116_v31 = vld [vmem:[#allocation8 + $0x38] sm:$0xff] }
  0x3d   :  { %707 = vmatpush.bf16.msrb.mxu0 %v2076_v32  ;;  %676 = vmatmul.bf16.vlgmr.msra.gmra.mxu1 %v261_v43 }
  0x3e   :  { %720 = vmatpush.bf16.msrb.mxu1 %v2084_v35  ;;  %689 = vmatmul.bf16.vlgmr.msra.gmra.mxu2 %v262_v40  ;;  %v2112_v40 = vld [vmem:[#allocation8 + $0x18] sm:$0xff] }
  0x3f   :  { %733 = vmatpush.bf16.msrb.mxu2 %v2092_v38  ;;  %702 = vmatmul.bf16.vlgmr.msra.gmra.mxu3 %v263_v42  ;;  %v2113_v38 = vld [vmem:[#allocation8 + $0x20] sm:$0xff] }
  0x40   :  { %746 = vmatpush.bf16.msrb.mxu3 %v2100_v39 }
  0x41   :  { %708 = vmatpush.bf16.msrb.mxu0 %v2075_v44 }
  0x42   :  { %721 = vmatpush.bf16.msrb.mxu1 %v2083_v45  ;;  %v2111_v45 = vld [vmem:[#allocation8 + $0x10] sm:$0xff] }
  0x43   :  { %734 = vmatpush.bf16.msrb.mxu2 %v2091_v46 }
  0x44   :  { %747 = vmatpush.bf16.msrb.mxu3 %v2099_v47 }
  0x45   :  { %709 = vmatpush.bf16.msrb.mxu0 %v2074_v48 }
  0x46   :  { %722 = vmatpush.bf16.msrb.mxu1 %v2082_v49 }
  0x47   :  { %735 = vmatpush.bf16.msrb.mxu2 %v2090_v50 }
  0x48   :  { %748 = vmatpush.bf16.msrb.mxu3 %v2098_v51 }
  0x49   :  { %710 = vmatpush.bf16.msrb.mxu0 %v2073_v52 }
  0x4a   :  { %723 = vmatpush.bf16.msrb.mxu1 %v2081_v53 }
  0x4b   :  { %736 = vmatpush.bf16.msrb.mxu2 %v2089_v54 }
  0x4c   :  { %749 = vmatpush.bf16.msrb.mxu3 %v2097_v55 }
  0x4d   :  { %711 = vmatpush.bf16.msrb.mxu0 %v2072_v56 }
  0x4e   :  { %724 = vmatpush.bf16.msrb.mxu1 %v2080_v57  ;;  %v2110_v57 = vld [vmem:[#allocation8 + $0x8] sm:$0xff] }
  0x4f   :  { %737 = vmatpush.bf16.msrb.mxu2 %v2088_v58  ;;  %v2109_v58 = vld [vmem:[#allocation8] sm:$0xff] }
  0x50   :  { %750 = vmatpush.bf16.msrb.mxu3 %v2096_v59  ;;  %v2007_v59 = vld [vmem:[#allocation10 + $0x1c0] sm:$0xf] }
  0x51   :  { %712 = vmatpush.bf16.msrb.mxu0 %v2071_v60  ;;  %v2177_v60 = vld [vmem:[#allocation10 + $0x1dc] sm:$0xf0] }
  0x52   :  { %725 = vmatpush.bf16.msrb.mxu1 %v2079_v61  ;;  %v2173_v61 = vld [vmem:[#allocation10 + $0x1c4] sm:$0xf] }
  0x53   :  { %738 = vmatpush.bf16.msrb.mxu2 %v2087_v62  ;;  %v2008_v62 = vor.u32 %v2177_v60, %v2007_v59  ;;  %v1855_v59 = vld [vmem:[#allocation10 + $0x88] sm:$0xf] }
  0x54   :  { %751 = vmatpush.bf16.msrb.mxu3 %v2095_v63  ;;  %v2009_v63 = vld [vmem:[#allocation10 + $0x1e0] sm:$0xf0]  ;;  %v2138_v60 = vld [vmem:[#allocation10 + $0xa4] sm:$0xf0] }
  0x55   :  { %713 = vmatpush.bf16.msrb.mxu0 %v2070_v0  ;;  %v2015_v0 = vld [vmem:[#allocation10 + $0x1c8] sm:$0xf] }
  0x56   :  { %726 = vmatpush.bf16.msrb.mxu1 %v2078_v1  ;;  %v2178_v1 = vld [vmem:[#allocation10 + $0x1e4] sm:$0xf0] }
  0x57   :  { %739 = vmatpush.bf16.msrb.mxu2 %v2086_v2  ;;  %v2012_v2 = vor.u32 %v2173_v61, %v2009_v63  ;;  %v2134_v61 = vld [vmem:[#allocation10 + $0x8c] sm:$0xf]  ;;  %v2193_v63 = vld [vmem:[%s2468_s4] ss:$0 sm:$0xff] }
  0x58   :  { %752 = vmatpush.bf16.msrb.mxu3 %v2094_v3  ;;  %v2016_v3 = vor.u32 %v2178_v1, %v2015_v0 }
  0x59   :  { %714 = vmatpush.bf16.msrb.mxu0 %v2069_v4  ;;  %v2174_v4 = vld [vmem:[#allocation10 + $0x1cc] sm:$0xf] }
  0x5a   :  { %727 = vmatpush.bf16.msrb.mxu1 %v2077_v5  ;;  %v2017_v5 = vld [vmem:[#allocation10 + $0x1e8] sm:$0xf0] }
  0x5b   :  { %740 = vmatpush.bf16.msrb.mxu2 %v2085_v6  ;;  %v1975_v6 = vld [vmem:[#allocation10 + $0x180] sm:$0xf]  ;;  %v2020_v7 = vor.u32 %v2174_v4, %v2017_v5  ;;  %v2125_v5 = vld [vmem:[#allocation10 + $0x44] sm:$0xf] }
  0x5c   :  { %753 = vmatpush.bf16.msrb.mxu3 %v2093_v9  ;;  %715 = vmatmul.bf16.vlgmr.msrb.gmra.mxu0 %v264_v12  ;;  %v2165_v9 = vld [vmem:[#allocation10 + $0x184] sm:$0xf]  ;;  %v1976_v11 = vor.u32 %v2169_v8, %v1975_v6  ;;  %v2129_v4 = vld [vmem:[#allocation10 + $0x5c] sm:$0xf0]  ;;  %v1823_v8 = vld [vmem:[#allocation10 + $0x48] sm:$0xf] }
  0x5d   :  { %728 = vmatmul.bf16.vlgmr.msrb.gmra.mxu1 %v265_v13  ;;  %829 = vmatpush.bf16.msra.mxu0 %v2108_v16  ;;  %v1980_v12 = vor.u32 %v2165_v9, %v1977_v10  ;;  %v1983_v13 = vld [vmem:[#allocation10 + $0x188] sm:$0xf]  ;;  %v2126_v10 = vld [vmem:[#allocation10 + $0x4c] sm:$0xf] }
  0x5e   :  { %741 = vmatmul.bf16.vlgmr.msrb.gmra.mxu2 %v266_v14  ;;  %912 = vmatpush.bf16.msra.mxu1 %v2116_v31  ;;  %v2170_v14 = vld [vmem:[#allocation10 + $0x1a4] sm:$0xf0]  ;;  %v2153_v31 = vld [vmem:[#allocation10 + $0x11c] sm:$0xf0] }
  0x5f   :  { %754 = vmatmul.bf16.vlgmr.msrb.gmra.mxu3 %v267_v15  ;;  %1329 = vmatpush.bf16.msra.mxu2 %v2008_v62  ;;  %v2166_v15 = vld [vmem:[#allocation10 + $0x18c] sm:$0xf]  ;;  %v1984_v16 = vor.u32 %v2170_v14, %v1983_v13  ;;  %v2130_v9 = vld [vmem:[#allocation10 + $0x64] sm:$0xf0]  ;;  %v1783_v13 = vld [vmem:[#allocation10] sm:$0xf] }
  0x60   :  { %1342 = vmatpush.bf16.msra.mxu3 %v2012_v2  ;;  %v1857_v62 = vld [vmem:[#allocation10 + $0xa8] sm:$0xf0]  ;;  %v1856_v2 = vor.u32 %v2138_v60, %v1855_v59  ;;  %v2121_v14 = vld [vmem:[#allocation10 + $0x1c] sm:$0xf0]  ;;  %v2159_v59 = vld [vmem:[#allocation10 + $0x154] sm:$0xf] }
  0x61   :  { %830 = vmatpush.bf16.msra.mxu0 %v2107_v17  ;;  %v1985_v17 = vld [vmem:[#allocation10 + $0x1a8] sm:$0xf0]  ;;  %v1860_v6 = vor.u32 %v2134_v61, %v1857_v62  ;;  %v1961_v61 = vld [vmem:[#allocation10 + $0x170] sm:$0xf0]  ;;  %v1967_v62 = vld [vmem:[#allocation10 + $0x158] sm:$0xf] }
  0x62   :  { %913 = vmatpush.bf16.msra.mxu1 %v2115_v34  ;;  %v1913_v34 = vld [vmem:[#allocation10 + $0x120] sm:$0xf0] }
  0x63   :  { %1330 = vmatpush.bf16.msra.mxu2 %v1976_v11  ;;  %v1825_v11 = vld [vmem:[#allocation10 + $0x68] sm:$0xf0] }
  0x64   :  { %1343 = vmatpush.bf16.msra.mxu3 %v1980_v12 }
  0x65   :  { %831 = vmatpush.bf16.msra.mxu0 %v2106_v18  ;;  %v1943_v18 = vld [vmem:[#allocation10 + $0x140] sm:$0xf] }
  0x66   :  { %914 = vmatpush.bf16.msra.mxu1 %v2114_v36  ;;  %v2154_v36 = vld [vmem:[#allocation10 + $0x124] sm:$0xf0] }
  0x69   :  { %832 = vmatpush.bf16.msra.mxu0 %v2105_v19  ;;  %v2161_v19 = vld [vmem:[#allocation10 + $0x15c] sm:$0xf0] }
  0x6a   :  { %915 = vmatpush.bf16.msra.mxu1 %v2113_v38  ;;  %v1921_v38 = vld [vmem:[#allocation10 + $0x128] sm:$0xf0] }
  0x6d   :  { %833 = vmatpush.bf16.msra.mxu0 %v2104_v20  ;;  %v1988_v20 = vor.u32 %v2166_v15, %v1985_v17  ;;  %v2117_v15 = vld [vmem:[#allocation10 + $0x4] sm:$0xf] }
  0x6e   :  { %916 = vmatpush.bf16.msra.mxu1 %v2112_v40 }
  0x71   :  { %834 = vmatpush.bf16.msra.mxu0 %v2103_v22  ;;  %v1945_v22 = vld [vmem:[#allocation10 + $0x160] sm:$0xf0] }
  0x72   :  { %917 = vmatpush.bf16.msra.mxu1 %v2111_v45 }
  0x75   :  { %835 = vmatpush.bf16.msra.mxu0 %v2102_v24  ;;  %v1944_v24 = vor.u32 %v2161_v19, %v1943_v18  ;;  %v1824_v18 = vor.u32 %v2130_v9, %v1823_v8  ;;  %v1785_v19 = vld [vmem:[#allocation10 + $0x20] sm:$0xf0]  ;;  %v1929_v9 = vld [vmem:[#allocation10 + $0x130] sm:$0xf0] }
  0x76   :  { %918 = vmatpush.bf16.msra.mxu1 %v2110_v57 }
  0x77   :  { %1331 = vmatpush.bf16.msra.mxu2 %v1944_v24  ;;  %v2118_v24 = vld [vmem:[#allocation10 + $0xc] sm:$0xf] }
  0x79   :  { %836 = vmatpush.bf16.msra.mxu0 %v2101_v28 }
  0x7a   :  { %919 = vmatpush.bf16.msra.mxu1 %v2109_v58  ;;  %v1849_v58 = vld [vmem:[#allocation10 + $0xa0] sm:$0xf0] }
  0x7d   :  { %1355 = vmatpush.bf16.msrb.mxu0 %v2016_v3  ;;  %v1815_v3 = vld [vmem:[#allocation10 + $0x40] sm:$0xf] }
  0x7e   :  { %1368 = vmatpush.bf16.msrb.mxu1 %v2020_v7  ;;  %v1817_v7 = vld [vmem:[#allocation10 + $0x60] sm:$0xf0]  ;;  %v1816_v12 = vor.u32 %v2129_v4, %v1815_v3  ;;  %v1969_v3 = vld [vmem:[#allocation10 + $0x178] sm:$0xf0] }
  0x7f   :  { %v1820_v17 = vor.u32 %v2125_v5, %v1817_v7  ;;  %v1927_v5 = vld [vmem:[#allocation10 + $0x110] sm:$0xf]  ;;  %v2151_v7 = vld [vmem:[#allocation10 + $0x114] sm:$0xf] }
  0x81   :  { %1356 = vmatpush.bf16.msrb.mxu0 %v1984_v16 }
  0x82   :  { %1369 = vmatpush.bf16.msrb.mxu1 %v1988_v20  ;;  %v1791_v20 = vld [vmem:[#allocation10 + $0x8] sm:$0xf] }
  0xb9   :  { %v664_v21 = vpop.f32.mrf.mxu0 }
  0xba   :  { %v677_v23 = vpop.f32.mrf.mxu1  ;;  %v665_v35 = vadd.f32 %v2192_v30, %v664_v21  ;;  %v2157_v21 = vld [vmem:[#allocation10 + $0x144] sm:$0xf]  ;;  %v1911_v30 = vld [vmem:[#allocation10 + $0x100] sm:$0xf] }
  0xbb   :  { %v1948_v28 = vor.u32 %v2157_v21, %v1945_v22  ;;  %v2122_v21 = vld [vmem:[#allocation10 + $0x24] sm:$0xf0] }
  0xbc   :  { %v678_v37 = vadd.f32 %v677_v23, %v665_v35  ;;  %v1951_v23 = vld [vmem:[#allocation10 + $0x148] sm:$0xf] }
  0xbd   :  { %v1919_v35 = vld [vmem:[#allocation10 + $0x108] sm:$0xf]  ;;  %1344 = vmatpush.bf16.msra.mxu3 %v1948_v28  ;;  %v2175_v28 = vld [vmem:[#allocation10 + $0x1d4] sm:$0xf] }
  0xc1   :  { %v690_v25 = vpop.f32.mrf.mxu2  ;;  %v666_v27 = vpop.f32.mrf.mxu0 }
  0xc2   :  { %v703_v26 = vpop.f32.mrf.mxu3  ;;  %v679_v29 = vpop.f32.mrf.mxu1  ;;  %v691_v39 = vadd.f32 %v690_v25, %v678_v37  ;;  %v2162_v25 = vld [vmem:[#allocation10 + $0x164] sm:$0xf0]  ;;  %v1953_v27 = vld [vmem:[#allocation10 + $0x168] sm:$0xf0] }
  0xc3   :  { %v1952_v29 = vor.u32 %v2162_v25, %v1951_v23  ;;  %v2150_v37 = vld [vmem:[#allocation10 + $0x10c] sm:$0xf]  ;;  %v1828_v23 = vor.u32 %v2126_v10, %v1825_v11  ;;  %v1935_v10 = vld [vmem:[#allocation10 + $0x118] sm:$0xf] }
  0xc4   :  { %v704_v41 = vadd.f32 %v703_v26, %v691_v39  ;;  %v2158_v26 = vld [vmem:[#allocation10 + $0x14c] sm:$0xf]  ;;  %v1912_v39 = vor.u32 %v2153_v31, %v1911_v30  ;;  %v1924_v45 = vor.u32 %v2150_v37, %v1921_v38  ;;  %v1784_v31 = vor.u32 %v2121_v14, %v1783_v13  ;;  %v2033_v37 = vld [vmem:[#allocation10 + $0x1f8] sm:$0xf0]  ;;  %v2156_v11 = vld [vmem:[#allocation10 + $0x134] sm:$0xf0] }
  0xc5   :  { %1357 = vmatpush.bf16.msrb.mxu0 %v1952_v29  ;;  %v1793_v25 = vld [vmem:[#allocation10 + $0x28] sm:$0xf0]  ;;  %v2025_v29 = vld [vmem:[#allocation10 + $0x1f0] sm:$0xf0]  ;;  %v1936_v13 = vor.u32 %v2156_v11, %v1935_v10  ;;  %v2152_v14 = vld [vmem:[#allocation10 + $0x11c] sm:$0xf] }
  0xc6   :  { %1332 = vmatpush.bf16.msra.mxu2 %v1912_v39  ;;  %v1796_v39 = vor.u32 %v2118_v24, %v1793_v25 }
  0xc9   :  { %v692_v32 = vpop.f32.mrf.mxu2 }
  0xca   :  { %v705_v33 = vpop.f32.mrf.mxu3  ;;  %v2149_v32 = vld [vmem:[#allocation10 + $0x104] sm:$0xf] }
  0xcb   :  { %v1956_v33 = vor.u32 %v2158_v26, %v1953_v27  ;;  %v1916_v40 = vor.u32 %v2149_v32, %v1913_v34  ;;  %v2023_v26 = vld [vmem:[#allocation10 + $0x1d0] sm:$0xf]  ;;  %v2031_v32 = vld [vmem:[#allocation10 + $0x1d8] sm:$0xf]  ;;  %v1788_v34 = vor.u32 %v2117_v15, %v1785_v19  ;;  %v1937_v15 = vld [vmem:[#allocation10 + $0x138] sm:$0xf0] }
  0xcc   :  { %v2179_v27 = vld [vmem:[#allocation10 + $0x1ec] sm:$0xf0]  ;;  %v2143_v19 = vld [vmem:[#allocation10 + $0xd4] sm:$0xf] }
  0xcd   :  { %1370 = vmatpush.bf16.msrb.mxu1 %v1956_v33  ;;  %1345 = vmatpush.bf16.msra.mxu3 %v1916_v40  ;;  %v2180_v33 = vld [vmem:[#allocation10 + $0x1f4] sm:$0xf0]  ;;  %v2024_v40 = vor.u32 %v2179_v27, %v2023_v26  ;;  %v2144_v26 = vld [vmem:[#allocation10 + $0xdc] sm:$0xf] }
  0xce   :  { %v1905_v27 = vld [vmem:[#allocation10 + $0xf8] sm:$0xf0] }
  0xd1   :  { %1371 = vmatpush.bf16.msrb.mxu1 %v1924_v45  ;;  %v2167_v45 = vld [vmem:[#allocation10 + $0x194] sm:$0xf] }
  0xd9   :  { %v716_v42 = vpop.f32.mrf.mxu0 }
  0xda   :  { %v729_v43 = vpop.f32.mrf.mxu1  ;;  %v717_v44 = vadd.f32 %v716_v42, %v704_v41  ;;  %v1920_v41 = vor.u32 %v2154_v36, %v1919_v35  ;;  %v1879_v42 = vld [vmem:[#allocation10 + $0xc0] sm:$0xf]  ;;  %v1792_v35 = vor.u32 %v2122_v21, %v1791_v20  ;;  %v2176_v36 = vld [vmem:[#allocation10 + $0x1dc] sm:$0xf]  ;;  %v1897_v21 = vld [vmem:[#allocation10 + $0xf0] sm:$0xf0] }
  0xdb   :  { %v1900_v24 = vor.u32 %v2143_v19, %v1897_v21 }
  0xdc   :  { %v730_v46 = vadd.f32 %v729_v43, %v717_v44  ;;  %v2145_v43 = vld [vmem:[#allocation10 + $0xdc] sm:$0xf0]  ;;  %v2141_v44 = vld [vmem:[#allocation10 + $0xc4] sm:$0xf]  ;;  %1358 = vmatpush.bf16.msrb.mxu0 %v1920_v41  ;;  %v2028_v41 = vor.u32 %v2175_v28, %v2025_v29  ;;  %v1863_v28 = vld [vmem:[#allocation10 + $0x90] sm:$0xf]  ;;  %v1908_v29 = vor.u32 %v2144_v26, %v1905_v27 }
  0xe1   :  { %v742_v47 = vpop.f32.mrf.mxu2  ;;  %v718_v50 = vpop.f32.mrf.mxu0 }
  0xe2   :  { %v755_v48 = vpop.f32.mrf.mxu3  ;;  %v743_v49 = vadd.f32 %v742_v47, %v730_v46  ;;  %v731_v51 = vpop.f32.mrf.mxu1  ;;  %v1881_v46 = vld [vmem:[#allocation10 + $0xe0] sm:$0xf0]  ;;  %v1887_v47 = vld [vmem:[#allocation10 + $0xc8] sm:$0xf]  ;;  %v1889_v50 = vld [vmem:[#allocation10 + $0xe8] sm:$0xf0] }
  0xe3   :  { %v1880_v51 = vor.u32 %v2145_v43, %v1879_v42  ;;  %v2032_v42 = vor.u32 %v2180_v33, %v2031_v32  ;;  %v1991_v43 = vld [vmem:[#allocation10 + $0x190] sm:$0xf]  ;;  %v1865_v32 = vld [vmem:[#allocation10 + $0xb0] sm:$0xf0] }
  0xe4   :  { %v756_v52 = vadd.f32 %v755_v48, %v743_v49  ;;  %v2146_v48 = vld [vmem:[#allocation10 + $0xe4] sm:$0xf0]  ;;  %v2142_v49 = vld [vmem:[#allocation10 + $0xcc] sm:$0xf] }
  0xe5   :  { %v1892_v57 = vor.u32 %v2142_v49, %v1889_v50  ;;  %1333 = vmatpush.bf16.msra.mxu2 %v1880_v51  ;;  %v2172_v49 = vld [vmem:[#allocation10 + $0x1b4] sm:$0xf0]  ;;  %v2168_v51 = vld [vmem:[#allocation10 + $0x19c] sm:$0xf] }
  0xe6   :  { %v759_v53 = vmax.f32 %v756_v52, 0.0  ;;  %v1884_v52 = vor.u32 %v2141_v44, %v1881_v46  ;;  %v2171_v44 = vld [vmem:[#allocation10 + $0x1ac] sm:$0xf0]  ;;  %v2036_v46 = vor.u32 %v2176_v36, %v2033_v37  ;;  %v2140_v36 = vld [vmem:[#allocation10 + $0xb4] sm:$0xf0] }
  0xe7   :  { %1372 = vmatpush.bf16.msrb.mxu1 %v1892_v57  ;;  %v1959_v57 = vld [vmem:[#allocation10 + $0x150] sm:$0xf]  ;;  %v2136_v37 = vld [vmem:[#allocation10 + $0x9c] sm:$0xf] }
  0xe8   :  { %v777_v54 = vpack.c.bf16 %v759_v53, %v759_v53  ;;  %v1888_v53 = vor.u32 %v2146_v48, %v1887_v47  ;;  %1346 = vmatpush.bf16.msra.mxu3 %v1884_v52  ;;  %v1993_v47 = vld [vmem:[#allocation10 + $0x1b0] sm:$0xf0]  ;;  %v1999_v48 = vld [vmem:[#allocation10 + $0x198] sm:$0xf]  ;;  %v2001_v52 = vld [vmem:[#allocation10 + $0x1b8] sm:$0xf0] }
  0xe9   :  { %v744_v55 = vpop.f32.mrf.mxu2 }
  0xea   :  { %v757_v56 = vpop.f32.mrf.mxu3  ;;  %837 = vmatmul.bf16.vlgmr.msra.gmra.mxu0 %v777_v54  ;;  %v1847_v54 = vld [vmem:[#allocation10 + $0x80] sm:$0xf] }
  0xeb   :  { %v2137_v55 = vld [vmem:[#allocation10 + $0x9c] sm:$0xf0]  ;;  %v2133_v56 = vld [vmem:[#allocation10 + $0x84] sm:$0xf]  ;;  %1359 = vmatpush.bf16.msrb.mxu0 %v1888_v53  ;;  %1373 = vmatpush.bf16.msrb.mxu1 %v1860_v6  ;;  %v1992_v53 = vor.u32 %v2171_v44, %v1991_v43  ;;  %v2155_v6 = vld [vmem:[#allocation10 + $0x12c] sm:$0xf0] }
  0xec   :  { %v1848_v0 = vor.u32 %v2137_v55, %v1847_v54  ;;  %v1852_v1 = vor.u32 %v2133_v56, %v1849_v58  ;;  %v1996_v54 = vor.u32 %v2167_v45, %v1993_v47  ;;  %v2000_v55 = vor.u32 %v2172_v49, %v1999_v48  ;;  %v2163_v58 = vld [vmem:[#allocation10 + $0x16c] sm:$0xf0]  ;;  %v2127_v43 = vld [vmem:[#allocation10 + $0x54] sm:$0xf]  ;;  %v1839_v45 = vld [vmem:[#allocation10 + $0x58] sm:$0xf] }
  0xed   :  { %v2004_v56 = vor.u32 %v2168_v51, %v2001_v52  ;;  %v1960_v60 = vor.u32 %v2163_v58, %v1959_v57  ;;  %v1928_v8 = vor.u32 %v2155_v6, %v1927_v5  ;;  %v1833_v44 = vld [vmem:[#allocation10 + $0x70] sm:$0xf0]  ;;  %v2132_v47 = vld [vmem:[#allocation10 + $0x74] sm:$0xf0]  ;;  %v2128_v48 = vld [vmem:[#allocation10 + $0x5c] sm:$0xf] }
  0xee   :  { %1334 = vmatpush.bf16.msra.mxu2 %v1848_v0  ;;  %1347 = vmatpush.bf16.msra.mxu3 %v1852_v1  ;;  %v1964_v0 = vor.u32 %v2159_v59, %v1961_v61  ;;  %v1841_v49 = vld [vmem:[#allocation10 + $0x78] sm:$0xf0]  ;;  %v1840_v51 = vor.u32 %v2132_v47, %v1839_v45  ;;  %v1799_v52 = vld [vmem:[#allocation10 + $0x10] sm:$0xf]  ;;  %v1807_v57 = vld [vmem:[#allocation10 + $0x18] sm:$0xf] }
  0xef   :  { %1360 = vmatpush.bf16.msrb.mxu0 %v1856_v2  ;;  %1374 = vmatpush.bf16.msrb.mxu1 %v1828_v23  ;;  %v2160_v2 = vld [vmem:[#allocation10 + $0x15c] sm:$0xf]  ;;  %v2148_v23 = vld [vmem:[#allocation10 + $0xf4] sm:$0xf0] }
  0xf0   :  { %v1972_v4 = vor.u32 %v2160_v2, %v1969_v3  ;;  %v2124_v58 = vld [vmem:[#allocation10 + $0x34] sm:$0xf0]  ;;  %v2120_v59 = vld [vmem:[#allocation10 + $0x1c] sm:$0xf] }
  0xf2   :  { %1335 = vmatpush.bf16.msra.mxu2 %v1816_v12  ;;  %1348 = vmatpush.bf16.msra.mxu3 %v1820_v17  ;;  %v1932_v12 = vor.u32 %v2151_v7, %v1929_v9  ;;  %v1895_v17 = vld [vmem:[#allocation10 + $0xd0] sm:$0xf]  ;;  %v990_v7 = vld [vmem:[#allocation11] sm:$0xff] }
  0xf3   :  { %1361 = vmatpush.bf16.msrb.mxu0 %v1824_v18  ;;  %1375 = vmatpush.bf16.msrb.mxu1 %v1796_v39  ;;  %v2147_v18 = vld [vmem:[#allocation10 + $0xec] sm:$0xf0]  ;;  %v1873_v39 = vld [vmem:[#allocation10 + $0xb8] sm:$0xf0]  ;;  %v996_v9 = vperm.slane %v990_v7, 3 }
  0xf4   :  { %v1896_v20 = vor.u32 %v2147_v18, %v1895_v17 }
  0xf6   :  { %1336 = vmatpush.bf16.msra.mxu2 %v1784_v31  ;;  %1349 = vmatpush.bf16.msra.mxu3 %v1788_v34  ;;  %v2135_v31 = vld [vmem:[#allocation10 + $0x94] sm:$0xf] }
  0xf7   :  { %1362 = vmatpush.bf16.msrb.mxu0 %v1792_v35  ;;  %v1868_v34 = vor.u32 %v2135_v31, %v1865_v32  ;;  %v1871_v35 = vld [vmem:[#allocation10 + $0x98] sm:$0xf]  ;;  %v998_v31 = vperm.slane %v990_v7, 5 }
  0xfa   :  { %1381 = vmatpush.bf16.msrb.mxu2 %v2024_v40  ;;  %1394 = vmatpush.bf16.msrb.mxu3 %v2028_v41  ;;  %v1831_v40 = vld [vmem:[#allocation10 + $0x50] sm:$0xf] }
  0xfb   :  { %1407 = vmatpush.bf16.msra.mxu0 %v2032_v42  ;;  %v2131_v41 = vld [vmem:[#allocation10 + $0x6c] sm:$0xf0]  ;;  %v1876_v42 = vor.u32 %v2136_v37, %v1873_v39 }
  0xfe   :  { %1382 = vmatpush.bf16.msrb.mxu2 %v1992_v53  ;;  %1395 = vmatpush.bf16.msrb.mxu3 %v1996_v54  ;;  %v2123_v53 = vld [vmem:[#allocation10 + $0x2c] sm:$0xf0]  ;;  %v2119_v54 = vld [vmem:[#allocation10 + $0x14] sm:$0xf] }
  0xff   :  { %1408 = vmatpush.bf16.msra.mxu0 %v2000_v55  ;;  %v1844_v55 = vor.u32 %v2128_v48, %v1841_v49  ;;  %v1800_v61 = vor.u32 %v2123_v53, %v1799_v52 }
 0x102   :  { %1383 = vmatpush.bf16.msrb.mxu2 %v1960_v60  ;;  %1396 = vmatpush.bf16.msrb.mxu3 %v1964_v0  ;;  %v1809_v60 = vld [vmem:[#allocation10 + $0x38] sm:$0xf0] }
 0x103   :  { %v1812_v0 = vor.u32 %v2120_v59, %v1809_v60 }
 0x106   :  { %1384 = vmatpush.bf16.msrb.mxu2 %v1928_v8  ;;  %1397 = vmatpush.bf16.msrb.mxu3 %v1932_v12  ;;  %v995_v8 = vperm.slane %v990_v7, 2 }
 0x10a   :  { %1385 = vmatpush.bf16.msrb.mxu2 %v1896_v20  ;;  %1398 = vmatpush.bf16.msrb.mxu3 %v1900_v24  ;;  %v999_v24 = vperm.slane %v990_v7, 6 }
 0x10e   :  { %1399 = vmatpush.bf16.msrb.mxu3 %v1868_v34 }
 0x167   :  { %v838_v16 = vpop.f32.mrf.mxu0 }
 0x168   :  { %v839_v22 = vadd.f32 %v2193_v63, %v838_v16  ;;  %v2164_v63 = vld [vmem:[#allocation10 + $0x174] sm:$0xf0]  ;;  %v1940_v16 = vor.u32 %v2152_v14, %v1937_v15  ;;  %v993_v14 = vperm.slane %v990_v7, 0  ;;  %v994_v15 = vperm.slane %v990_v7, 1 }
 0x169   :  { %v1968_v1 = vor.u32 %v2164_v63, %v1967_v62  ;;  %v1808_v63 = vor.u32 %v2124_v58, %v1807_v57 }
 0x16a   :  { %v842_v30 = vmax.f32 %v839_v22, 0.0  ;;  %v1903_v22 = vld [vmem:[#allocation10 + $0xd8] sm:$0xf] }
 0x16b   :  { %1409 = vmatpush.bf16.msra.mxu0 %v1968_v1  ;;  %v1904_v25 = vor.u32 %v2148_v23, %v1903_v22  ;;  %v2194_v1 = vld [vmem:[%s2470_s6] ss:$0 sm:$0xff]  ;;  %s2383_s6 = smov [#allocation13]  }
 0x16c   :  { %v860_v38 = vpack.c.bf16 %v842_v30, %v842_v30  ;;  %v2139_v30 = vld [vmem:[#allocation10 + $0xac] sm:$0xf0]  ;;  %s1446_s20 = sshll.u32 %s2383_s6, 4  ;;  %s1447_s20 = int_to_ptr.vmem [resolvable:$true] %s1446_s20 }
 0x16d   :  { %v1864_v33 = vor.u32 %v2139_v30, %v1863_v28  ;;  %v997_v30 = vperm.slane %v990_v7, 4 }
 0x16e   :  { %920 = vmatmul.bf16.vlgmr.msra.gmra.mxu1 %v860_v38  ;;  %v1872_v38 = vor.u32 %v2140_v36, %v1871_v35 }
 0x16f   :  { %v840_v50 = vpop.f32.mrf.mxu0  ;;  %1420 = vmatpush.bf16.msra.mxu1 %v2036_v46  ;;  %1410 = vmatpush.bf16.msra.mxu0 %v1936_v13  ;;  %v1832_v46 = vor.u32 %v2131_v41, %v1831_v40 }
 0x170   :  { %1386 = vmatpush.bf16.msrb.mxu2 %v1864_v33  ;;  %v1836_v50 = vor.u32 %v2127_v43, %v1833_v44 }
 0x172   :  { %1400 = vmatpush.bf16.msrb.mxu3 %v1836_v50 }
 0x173   :  { %1421 = vmatpush.bf16.msra.mxu1 %v2004_v56  ;;  %1411 = vmatpush.bf16.msra.mxu0 %v1904_v25  ;;  %v1801_v56 = vld [vmem:[#allocation10 + $0x30] sm:$0xf0]  ;;  %v1000_v25 = vperm.slane %v990_v7, 7 }
 0x174   :  { %1387 = vmatpush.bf16.msrb.mxu2 %v1832_v46  ;;  %v1804_v62 = vor.u32 %v2119_v54, %v1801_v56 }
 0x176   :  { %1401 = vmatpush.bf16.msrb.mxu3 %v1804_v62 }
 0x177   :  { %1422 = vmatpush.bf16.msra.mxu1 %v1972_v4  ;;  %1412 = vmatpush.bf16.msra.mxu0 %v1872_v38 }
 0x178   :  { %1388 = vmatpush.bf16.msrb.mxu2 %v1800_v61 }
 0x17b   :  { %1423 = vmatpush.bf16.msra.mxu1 %v1940_v16  ;;  %1413 = vmatpush.bf16.msra.mxu0 %v1840_v51 }
 0x17f   :  { %1424 = vmatpush.bf16.msra.mxu1 %v1908_v29  ;;  %1414 = vmatpush.bf16.msra.mxu0 %v1808_v63 }
 0x183   :  { %1425 = vmatpush.bf16.msra.mxu1 %v1876_v42 }
 0x187   :  { %1426 = vmatpush.bf16.msra.mxu1 %v1844_v55 }
 0x18b   :  { %1427 = vmatpush.bf16.msra.mxu1 %v1812_v0 }
 0x1eb   :  { %v921_v2 = vpop.f32.mrf.mxu1 }
 0x1ec   :  { %v922_v3 = vadd.f32 %v2194_v1, %v921_v2 }
 0x1ee   :  { %v925_v4 = vmax.f32 %v922_v3, 0.0 }
 0x1f0   :  { %v991_v5 = vpack.c.bf16 %v925_v4, %v925_v4 }
 0x1f2   :  { %1337 = vmatmul.bf16.vlgmr.msra.gmra.mxu2 %v991_v5  ;;  %1350 = vmatmul.bf16.vlgmr.msra.gmra.mxu3 %v991_v5 }
 0x1f3   :  { %1363 = vmatmul.bf16.vlgmr.msrb.gmra.mxu0 %v991_v5  ;;  %1376 = vmatmul.bf16.vlgmr.msrb.gmra.mxu1 %v991_v5  ;;  %v923_v6 = vpop.f32.mrf.mxu1 }
 0x202   :  { %1389 = vmatmul.bf16.vlgmr.msrb.gmra.mxu2 %v991_v5  ;;  %1402 = vmatmul.bf16.vlgmr.msrb.gmra.mxu3 %v991_v5 }
 0x203   :  { %1415 = vmatmul.bf16.vlgmr.msra.gmra.mxu0 %v991_v5  ;;  %1428 = vmatmul.bf16.vlgmr.msra.gmra.mxu1 %v991_v5 }
 0x270   :  { %v1364_v10 = vpop.f32.mrf.mxu0  ;;  %v1377_v11 = vpop.f32.mrf.mxu1 }
 0x271   :  { %v1365_v12 = vadd.f32 %v1364_v10, %v995_v8  ;;  %v1378_v13 = vadd.f32 %v1377_v11, %v996_v9 }
 0x273   :  { %1435 = vst [vmem:[#allocation13 + $0x10] sm:$0xff] %v1365_v12 }
 0x274   :  { %1436 = vst [vmem:[#allocation13 + $0x18] sm:$0xff] %v1378_v13 }
 0x275   :  { %v1338_v16 = vpop.f32.mrf.mxu2  ;;  %v1351_v17 = vpop.f32.mrf.mxu3 }
 0x276   :  { %v1339_v18 = vadd.f32 %v1338_v16, %v993_v14  ;;  %v1352_v19 = vadd.f32 %v1351_v17, %v994_v15 }
 0x278   :  { %1433 = vst [vmem:[#allocation13] sm:$0xff] %v1339_v18  ;;  %v1366_v20 = vpop.f32.mrf.mxu0  ;;  %v1379_v21 = vpop.f32.mrf.mxu1 }
 0x279   :  { %1434 = vst [vmem:[#allocation13 + $0x8] sm:$0xff] %v1352_v19 }
 0x27d   :  { %v1340_v22 = vpop.f32.mrf.mxu2  ;;  %v1353_v23 = vpop.f32.mrf.mxu3 }
 0x280   :  { %v1416_v26 = vpop.f32.mrf.mxu0  ;;  %v1429_v27 = vpop.f32.mrf.mxu1 }
 0x281   :  { %v1417_v28 = vadd.f32 %v1416_v26, %v999_v24  ;;  %v1430_v29 = vadd.f32 %v1429_v27, %v1000_v25 }
 0x283   :  { %1439 = vst [vmem:[#allocation13 + $0x30] sm:$0xff] %v1417_v28 }
 0x284   :  { %1440 = vst [vmem:[#allocation13 + $0x38] sm:$0xff] %v1430_v29 }
 0x285   :  { %v1390_v32 = vpop.f32.mrf.mxu2  ;;  %v1403_v33 = vpop.f32.mrf.mxu3 }
 0x286   :  { %v1391_v34 = vadd.f32 %v1390_v32, %v997_v30  ;;  %v1404_v35 = vadd.f32 %v1403_v33, %v998_v31 }
 0x288   :  { %1437 = vst [vmem:[#allocation13 + $0x20] sm:$0xff] %v1391_v34  ;;  %v1418_v36 = vpop.f32.mrf.mxu0  ;;  %v1431_v37 = vpop.f32.mrf.mxu1 }
 0x289   :  { %1438 = vst [vmem:[#allocation13 + $0x28] sm:$0xff] %v1404_v35 }
 0x28a   :  { %1451 = dma.vmem_to_hbm [thread:$0]  %s1447_s20, 1024, %s1449_s23, [#allocation4]  }
 0x28d   :  { %v1392_v38 = vpop.f32.mrf.mxu2  ;;  %v1405_v39 = vpop.f32.mrf.mxu3 }
 0x28e   :  { %2371 = dma.done.wait [#allocation4], 1024  }
 0x28f   :  { %2372 = vsyncadd [#allocation4], 4294966272 }
 0x290   :  { %1456 = vsyncpa [#allocation3], 1 }
 0x291   :  { %1457 = vsyncpa [#allocation6], 1 }
 0x292   :  { %1458 = vsyncpa [#allocation9], 1 }
 0x293   :  { %1459 = vsyncpa [#allocation12], 1 }
 0x294   :  { %1460 = vsyncpa [#allocation4], 1 }

</bundles_post_ra>
